<compile_context>
chip_gen: v7x
topology: tpu7x:2x2x1
jax: 0.10.0
libtpu: 0.0.40
codegen_flags: <defaults>
</compile_context>

<pallas_src>
import math
from functools import partial

import jax
import jax.numpy as jnp
from jax.experimental import pallas as pl
from jax.experimental.pallas import tpu as pltpu

# ---------------- hyper-parameters (SS2D defaults, d_model = hidden_dim = 16) ----------------
D_MODEL = 16
D_STATE = 16
D_CONV = 3
EXPAND = 2
D_INNER = EXPAND * D_MODEL            # 32
DT_RANK = math.ceil(D_MODEL / 16)     # 1
K_DIR = 4
LN_EPS = 1e-5                         # SS2D.out_norm (nn.LayerNorm default)
LN1_EPS = 1e-6                        # VSSBlock.ln_1 (partial(nn.LayerNorm, eps=1e-6))

assert DT_RANK == 1  # kernel specializes the dt projection to rank-1 (broadcast) form

# ---- packed-weight row layouts ----
# wp16 (34, 16):  [ out_proj^T (32 rows) | ln_1 gamma (1) | ln_1 beta (1) ]
R_WOUT, R_LN1G, R_LN1B = 0, 32, 33
WP16_ROWS = 34
# wp32 (149, 32): [ x_proj B rows (64) | x_proj C rows (64) | conv taps (9) | conv bias (1)
#                   | dt_projs_w (4) | sum_k Ds (1) | out_norm gamma (1) | out_norm beta (1)
#                   | x_proj dt rows (4) ]
R_XB, R_XC, R_CONVK, R_CONVB = 0, 64, 128, 137
R_DTW, R_DSUM, R_ONG, R_ONB, R_XDT = 138, 142, 143, 144, 145
WP32_ROWS = 149


def _silu(v):
    # exact SiLU: v * sigmoid(v)
    return v * (1.0 / (1.0 + jnp.exp(-v)))


# =============================== fused Pallas kernel ===============================
def _vss_fused_kernel(x_ref, cmask_ref, win_ref, wp16_ref, wp32_ref, o_ref, *, h, w):
    """Per-batch block: x (L, d_model) -> out (L, d_model). Everything stays in VMEM."""
    L = h * w
    D = D_INNER
    DS = D_STATE

    x = x_ref[...]                                                       # (L, 16) f32

    # ---- VSSBlock.ln_1 ----
    mu = jnp.mean(x, axis=-1, keepdims=True)
    xc = x - mu
    var = jnp.mean(xc * xc, axis=-1, keepdims=True)
    xn = (xc * jax.lax.rsqrt(var + LN1_EPS)
          * wp16_ref[R_LN1G:R_LN1G + 1, :] + wp16_ref[R_LN1B:R_LN1B + 1, :])

    # ---- SS2D.in_proj (no bias) ----
    xz = jnp.dot(xn, win_ref[...], preferred_element_type=jnp.float32)   # (L, 64)
    xpart = xz[:, :D]                                                    # (L, 32)
    z = xz[:, D:]                                                        # (L, 32)

    # ---- depthwise 3x3 conv + SiLU, zero padding done in-register (no HBM pad pass) ----
    # h-major flattening: spatial (h+dy-1, w+dx-1) == row l + dy*w + dx of the padded buffer;
    # horizontal wrap-around is killed by the precomputed left/right boundary masks,
    # vertical out-of-bounds by the zero halo rows.
    zpad = jnp.zeros((w + 1, D), jnp.float32)
    padded = jnp.concatenate([zpad, xpart, zpad], axis=0)                # (L + 2w + 2, 32)
    m_left = cmask_ref[:, 0:1]                                           # (L, 1): 0 where w==0
    m_right = cmask_ref[:, 1:2]                                          # (L, 1): 0 where w==W-1
    acc = jnp.zeros((L, D), jnp.float32)
    for dx in range(D_CONV):
        col = jnp.zeros((L, D), jnp.float32)
        for dy in range(D_CONV):
            r = R_CONVK + dy * D_CONV + dx
            tap = wp32_ref[r:r + 1, :]                                   # (1, 32)
            start = dy * w + dx
            col = col + padded[start:start + L, :] * tap
        if dx == 0:
            col = col * m_left
        elif dx == 2:
            col = col * m_right
        acc = acc + col
    u = _silu(acc + wp32_ref[R_CONVB:R_CONVB + 1, :])                    # (L, 32)

    # ---- 4-direction selective scan, collapsed algebraically ----
    # Directions 0,1 end at h-major position L-1, reversed directions 2,3 end at 0.
    # v_k = XB_k^T (XC_k @ u[end_k]); then s_k[l] = <u[l], v_k>.
    u0 = u[0:1, :]
    uL = u[L - 1:L, :]
    v_rows = []
    for k in range(K_DIR):
        u_end = uL if k < 2 else u0                                      # (1, 32)
        xC_k = wp32_ref[R_XC + k * DS:R_XC + (k + 1) * DS, :]            # (16, 32)
        xB_k = wp32_ref[R_XB + k * DS:R_XB + (k + 1) * DS, :]            # (16, 32)
        c_col = jnp.sum(xC_k * u_end, axis=-1, keepdims=True)            # (16, 1)  = C_k(u_end)
        v_rows.append(jnp.sum(xB_k * c_col, axis=0, keepdims=True))      # (1, 32)  = v_k
    vr = jnp.concatenate(v_rows, axis=0)                                 # (4, 32)

    cdims = (((1,), (1,)), ((), ()))
    sv = jax.lax.dot_general(u, vr, cdims,
                             preferred_element_type=jnp.float32)         # (L, 4)  s_k per dir
    dt_raw = jax.lax.dot_general(u, wp32_ref[R_XDT:R_XDT + K_DIR, :], cdims,
                                 preferred_element_type=jnp.float32)     # (L, 4)  dt per dir
    term = jnp.dot(sv * dt_raw, wp32_ref[R_DTW:R_DTW + K_DIR, :],
                   preferred_element_type=jnp.float32)                   # (L, 32)
    y = u * (term + wp32_ref[R_DSUM:R_DSUM + 1, :])                      # y1+y2+y3+y4

    # ---- SS2D.out_norm (LayerNorm over D_INNER) ----
    muy = jnp.mean(y, axis=-1, keepdims=True)
    yc = y - muy
    vy = jnp.mean(yc * yc, axis=-1, keepdims=True)
    yn = (yc * jax.lax.rsqrt(vy + LN_EPS)
          * wp32_ref[R_ONG:R_ONG + 1, :] + wp32_ref[R_ONB:R_ONB + 1, :])

    # ---- gate, out_proj, VSSBlock residual ----
    gated = yn * _silu(z)
    out = jnp.dot(gated, wp16_ref[R_WOUT:R_WOUT + D, :],
                  preferred_element_type=jnp.float32)                    # (L, 16)
    o_ref[...] = x + out


# =============================== forward wrapper ===============================
def vss_block_forward(x, params):
    B, H, W, Cm = x.shape
    assert Cm == D_MODEL
    L = H * W
    D = D_INNER
    assert L % 8 == 0 or B == 1, "H*W must be a multiple of 8 when B > 1"

    x_flat = x.reshape(B * L, Cm).astype(jnp.float32)

    # boundary masks for the conv (left / right columns), tiny (L, 2) operand
    wpos = jnp.arange(L, dtype=jnp.int32) % W
    cmask = jnp.stack([(wpos > 0).astype(jnp.float32),
                       (wpos < W - 1).astype(jnp.float32)], axis=1)       # (L, 2)

    # ---- weight packing ----
    win_t = params["in_proj_w"].T.astype(jnp.float32)                     # (16, 64)

    wp16 = jnp.concatenate([
        params["out_proj_w"].T.astype(jnp.float32),                       # (32, 16)
        params["ln1_g"].reshape(1, Cm).astype(jnp.float32),
        params["ln1_b"].reshape(1, Cm).astype(jnp.float32),
    ], axis=0)                                                            # (34, 16)

    xp_w = params["x_proj_w"].astype(jnp.float32)                         # (4, 33, 32) rows [dt|B|C]
    xwB = xp_w[:, DT_RANK:DT_RANK + D_STATE, :].reshape(K_DIR * D_STATE, D)   # (64, 32)
    xwC = xp_w[:, DT_RANK + D_STATE:, :].reshape(K_DIR * D_STATE, D)          # (64, 32)
    xdt = xp_w[:, 0:DT_RANK, :].reshape(K_DIR * DT_RANK, D)                   # (4, 32)
    k9 = jnp.transpose(params["conv_w"][:, 0], (1, 2, 0)).reshape(
        D_CONV * D_CONV, D).astype(jnp.float32)                           # (9, 32)
    cb = params["conv_b"].reshape(1, D).astype(jnp.float32)
    dtw = params["dt_projs_w"][:, :, 0].astype(jnp.float32)               # (4, 32)
    dsum = params["Ds"].reshape(K_DIR, D).sum(axis=0).reshape(1, D).astype(jnp.float32)
    ong = params["ln_g"].reshape(1, D).astype(jnp.float32)
    onb = params["ln_b"].reshape(1, D).astype(jnp.float32)
    wp32 = jnp.concatenate([xwB, xwC, k9, cb, dtw, dsum, ong, onb, xdt], axis=0)  # (149, 32)
    assert wp32.shape == (WP32_ROWS, D) and wp16.shape == (WP16_ROWS, Cm)

    # TODO(synk): for very large H*W add an L-tile grid axis (needs a tiny u[0]/u[L-1]
    # pre-pass plus conv halo rows) so per-batch blocks stay within v7x's 64 MiB VMEM.
    out_flat = pl.pallas_call(
        partial(_vss_fused_kernel, h=H, w=W),
        grid=(B,),
        in_specs=[
            pl.BlockSpec((L, Cm), lambda b: (b, 0)),            # x (residual + ln input)
            pl.BlockSpec((L, 2), lambda b: (0, 0)),             # conv boundary masks
            pl.BlockSpec((Cm, 2 * D), lambda b: (0, 0)),        # in_proj^T
            pl.BlockSpec((WP16_ROWS, Cm), lambda b: (0, 0)),    # out_proj^T | ln_1 affine
            pl.BlockSpec((WP32_ROWS, D), lambda b: (0, 0)),     # everything D_INNER-wide
        ],
        out_specs=pl.BlockSpec((L, Cm), lambda b: (b, 0)),
        out_shape=jax.ShapeDtypeStruct((B * L, Cm), jnp.float32),
        compiler_params=pltpu.CompilerParams(dimension_semantics=("parallel",)),
    )(x_flat, cmask, win_t, wp16, wp32)

    # dropout / DropPath are identity at the default rates (0.0)
    return out_flat.reshape(B, H, W, Cm)


# =============================== plain-JAX reference (literal port) ===============================
def vss_block_reference(x, params):
    B, H, W, Cm = x.shape
    L = H * W
    D = D_INNER
    # ln_1
    mu = jnp.mean(x, axis=-1, keepdims=True)
    var = jnp.mean((x - mu) ** 2, axis=-1, keepdims=True)
    xn = (x - mu) / jnp.sqrt(var + LN1_EPS) * params["ln1_g"] + params["ln1_b"]
    # in_proj
    xz = jnp.einsum("bhwc,oc->bhwo", xn, params["in_proj_w"])
    xpart, z = xz[..., :D], xz[..., D:]
    # depthwise 3x3 conv (NHWC), padding 1, + bias, SiLU
    xi = jnp.pad(xpart, ((0, 0), (1, 1), (1, 1), (0, 0)))
    kw = params["conv_w"][:, 0]                                           # (D, 3, 3)
    conv = jnp.zeros((B, H, W, D), jnp.float32)
    for dy in range(3):
        for dx in range(3):
            conv = conv + xi[:, dy:dy + H, dx:dx + W, :] * kw[:, dy, dx]
    conv = conv + params["conv_b"]
    u_act = conv * jax.nn.sigmoid(conv)
    # forward_core: 4-direction stack
    x_chw = jnp.transpose(u_act, (0, 3, 1, 2))                            # (B, D, H, W)
    x_hmaj = x_chw.reshape(B, D, L)
    x_wmaj = jnp.transpose(x_chw, (0, 1, 3, 2)).reshape(B, D, L)
    xs = jnp.stack([x_hmaj, x_wmaj, x_hmaj[:, :, ::-1], x_wmaj[:, :, ::-1]], axis=1)
    x_dbl = jnp.einsum("bkdl,kcd->bkcl", xs, params["x_proj_w"])
    dts = x_dbl[:, :, :DT_RANK, :]
    Bs = x_dbl[:, :, DT_RANK:DT_RANK + D_STATE, :]
    Cs = x_dbl[:, :, DT_RANK + D_STATE:, :]
    dts_full = jnp.einsum("bkrl,kdr->bkdl", dts, params["dt_projs_w"])
    Ds = params["Ds"].reshape(K_DIR, D)
    # degenerate selective_scan (zero initial state, C taken at position L-1 of each scan)
    s = jnp.einsum("bknl,bkn->bkl", Bs, Cs[:, :, :, L - 1])
    ys = dts_full * xs * s[:, :, None, :] + xs * Ds[None, :, :, None]     # (B, 4, D, L)
    y0 = ys[:, 0]
    y2 = ys[:, 2, :, ::-1]
    y1 = jnp.transpose(ys[:, 1].reshape(B, D, W, H), (0, 1, 3, 2)).reshape(B, D, L)
    y3 = jnp.transpose(ys[:, 3, :, ::-1].reshape(B, D, W, H), (0, 1, 3, 2)).reshape(B, D, L)
    y = jnp.transpose(y0 + y1 + y2 + y3, (0, 2, 1)).reshape(B, H, W, D)
    # out_norm, gate, out_proj, residual
    muy = jnp.mean(y, axis=-1, keepdims=True)
    vy = jnp.mean((y - muy) ** 2, axis=-1, keepdims=True)
    yn = (y - muy) / jnp.sqrt(vy + LN_EPS) * params["ln_g"] + params["ln_b"]
    yg = yn * (z * jax.nn.sigmoid(z))
    out = jnp.einsum("bhwd,od->bhwo", yg, params["out_proj_w"])
    return x + out


# =============================== deterministic parameter init ===============================
def init_params(key):
    ks = jax.random.split(key, 8)
    k_in = 1.0 / math.sqrt(D_MODEL)
    k_conv = 1.0 / math.sqrt(D_CONV * D_CONV)      # depthwise: fan_in = 1*3*3
    k_xp = 1.0 / math.sqrt(D_INNER)
    k_out = 1.0 / math.sqrt(D_INNER)
    dt_init_std = DT_RANK ** (-0.5)

    # dt bias (mathematically unused in this forward, kept for fidelity to __init__)
    dt = jnp.exp(jax.random.uniform(ks[6], (K_DIR, D_INNER), jnp.float32)
                 * (math.log(0.1) - math.log(0.001)) + math.log(0.001))
    dt = jnp.maximum(dt, 1e-4)
    inv_dt = dt + jnp.log(-jnp.expm1(-dt))

    return {
        "ln1_g": jnp.ones((D_MODEL,), jnp.float32),                          # VSSBlock.ln_1
        "ln1_b": jnp.zeros((D_MODEL,), jnp.float32),
        "in_proj_w": jax.random.uniform(ks[0], (2 * D_INNER, D_MODEL), jnp.float32, -k_in, k_in),
        "conv_w": jax.random.uniform(ks[1], (D_INNER, 1, D_CONV, D_CONV), jnp.float32, -k_conv, k_conv),
        "conv_b": jax.random.uniform(ks[2], (D_INNER,), jnp.float32, -k_conv, k_conv),
        "x_proj_w": jax.random.uniform(ks[3], (K_DIR, DT_RANK + 2 * D_STATE, D_INNER),
                                       jnp.float32, -k_xp, k_xp),
        "dt_projs_w": jax.random.uniform(ks[4], (K_DIR, D_INNER, DT_RANK), jnp.float32,
                                         -dt_init_std, dt_init_std),
        "dt_projs_b": inv_dt,                                                 # unused in forward
        "A_logs": jnp.tile(jnp.log(jnp.arange(1, D_STATE + 1, dtype=jnp.float32))[None, :],
                           (K_DIR * D_INNER, 1)),                             # unused in forward
        "Ds": jnp.ones((K_DIR * D_INNER,), jnp.float32),
        "ln_g": jnp.ones((D_INNER,), jnp.float32),                            # SS2D.out_norm
        "ln_b": jnp.zeros((D_INNER,), jnp.float32),
        "out_proj_w": jax.random.uniform(ks[5], (D_MODEL, D_INNER), jnp.float32, -k_out, k_out),
    }


if __name__ == "__main__":
    key = jax.random.PRNGKey(0)
    pkey, xkey = jax.random.split(key)
    params = init_params(pkey)

    B, H, W = 2, 8, 8
    x = jax.random.normal(xkey, (B, H, W, D_MODEL), jnp.float32)

    fwd = jax.jit(lambda inp: vss_block_forward(inp, params))
    out = fwd(x)
    jax.block_until_ready(out)

    assert out.shape == (B, H, W, D_MODEL) and out.dtype == jnp.float32
    assert bool(jnp.all(jnp.isfinite(out)))

    # numerical validation against a literal JAX port of the PyTorch forward
    ref = vss_block_reference(x.astype(jnp.float32), params)
    err = float(jnp.max(jnp.abs(out - ref)))
    assert err < 2e-2, f"kernel/reference mismatch, max abs err = {err}"

    print("KERNEL_OK")
</pallas_src>

<mosaic_0001>
module attributes {stable_mosaic.version = 11 : i64} {
  func.func @_vss_fused_kernel(%arg0: i32, %arg1: memref<64x16xf32, #tpu.memory_space<vmem>>, %arg2: memref<64x2xf32, #tpu.memory_space<vmem>>, %arg3: memref<16x64xf32, #tpu.memory_space<vmem>>, %arg4: memref<34x16xf32, #tpu.memory_space<vmem>>, %arg5: memref<149x32xf32, #tpu.memory_space<vmem>>, %arg6: memref<64x16xf32, #tpu.memory_space<vmem>>) attributes {dimension_semantics = [#tpu.dimension_semantics<parallel>], iteration_bounds = array<i64: 2>, scalar_prefetch = 0 : i64, scratch_operands = 0 : i64, tpu.core_type = #tpu.core_type<tc>, window_params = [{transform_indices = @transform_0, window_bounds = array<i64: 64, 16>}, {pipeline_mode = #tpu.pipeline_mode<synchronous>, transform_indices = @transform_1, window_bounds = array<i64: 64, 2>}, {pipeline_mode = #tpu.pipeline_mode<synchronous>, transform_indices = @transform_2, window_bounds = array<i64: 16, 64>}, {pipeline_mode = #tpu.pipeline_mode<synchronous>, transform_indices = @transform_3, window_bounds = array<i64: 34, 16>}, {pipeline_mode = #tpu.pipeline_mode<synchronous>, transform_indices = @transform_4, window_bounds = array<i64: 149, 32>}, {transform_indices = @transform_5, window_bounds = array<i64: 64, 16>}]} {
    %c0 = arith.constant 0 : index
    %c0_0 = arith.constant 0 : index
    %0 = vector.load %arg1[%c0, %c0_0] : memref<64x16xf32, #tpu.memory_space<vmem>>, vector<64x16xf32>
    %cst = arith.constant dense<0.000000e+00> : vector<64xf32>
    %1 = vector.multi_reduction <add>, %0, %cst [1] : vector<64x16xf32> to vector<64xf32>
    %2 = vector.shape_cast %1 : vector<64xf32> to vector<64x1xf32>
    %cst_1 = arith.constant 1.600000e+01 : f32
    %3 = vector.broadcast %cst_1 : f32 to vector<64x1xf32>
    %4 = arith.divf %2, %3 : vector<64x1xf32>
    %5 = vector.broadcast %4 : vector<64x1xf32> to vector<64x16xf32>
    %6 = arith.subf %0, %5 : vector<64x16xf32>
    %7 = arith.mulf %6, %6 : vector<64x16xf32>
    %cst_2 = arith.constant dense<0.000000e+00> : vector<64xf32>
    %8 = vector.multi_reduction <add>, %7, %cst_2 [1] : vector<64x16xf32> to vector<64xf32>
    %9 = vector.shape_cast %8 : vector<64xf32> to vector<64x1xf32>
    %cst_3 = arith.constant 1.600000e+01 : f32
    %10 = vector.broadcast %cst_3 : f32 to vector<64x1xf32>
    %11 = arith.divf %9, %10 : vector<64x1xf32>
    %cst_4 = arith.constant 9.99999997E-7 : f32
    %12 = vector.broadcast %cst_4 : f32 to vector<64x1xf32>
    %13 = arith.addf %11, %12 : vector<64x1xf32>
    %14 = math.rsqrt %13 : vector<64x1xf32>
    %15 = vector.broadcast %14 : vector<64x1xf32> to vector<64x16xf32>
    %16 = arith.mulf %6, %15 : vector<64x16xf32>
    %c32 = arith.constant 32 : index
    %c0_5 = arith.constant 0 : index
    %17 = vector.load %arg4[%c32, %c0_5] : memref<34x16xf32, #tpu.memory_space<vmem>>, vector<1x16xf32>
    %18 = vector.broadcast %17 : vector<1x16xf32> to vector<64x16xf32>
    %19 = arith.mulf %16, %18 : vector<64x16xf32>
    %c33 = arith.constant 33 : index
    %c0_6 = arith.constant 0 : index
    %20 = vector.load %arg4[%c33, %c0_6] : memref<34x16xf32, #tpu.memory_space<vmem>>, vector<1x16xf32>
    %21 = vector.broadcast %20 : vector<1x16xf32> to vector<64x16xf32>
    %22 = arith.addf %19, %21 : vector<64x16xf32>
    %c0_7 = arith.constant 0 : index
    %c0_8 = arith.constant 0 : index
    %23 = vector.load %arg3[%c0_7, %c0_8] : memref<16x64xf32, #tpu.memory_space<vmem>>, vector<16x64xf32>
    %cst_9 = arith.constant dense<0.000000e+00> : vector<64x64xf32>
    %24 = tpu.matmul %22, %23, %cst_9 {dimension_numbers = #tpu.dot_dimension_numbers<[1], [0], [0], [1], [0, 0, 1, 1], [], []>} : vector<64x16xf32>, vector<16x64xf32>, vector<64x64xf32> -> vector<64x64xf32>
    %25 = vector.extract_strided_slice %24 {offsets = [0, 0], sizes = [64, 32], strides = [1, 1]} : vector<64x64xf32> to vector<64x32xf32>
    %26 = vector.extract_strided_slice %24 {offsets = [0, 32], sizes = [64, 32], strides = [1, 1]} : vector<64x64xf32> to vector<64x32xf32>
    %cst_10 = arith.constant 0.000000e+00 : f32
    %27 = vector.broadcast %cst_10 : f32 to vector<9x32xf32>
    %28 = tpu.concatenate %27, %25, %27 in 0 : vector<9x32xf32>, vector<64x32xf32>, vector<9x32xf32> -> vector<82x32xf32>
    %c0_11 = arith.constant 0 : index
    %c0_12 = arith.constant 0 : index
    %29 = vector.load %arg2[%c0_11, %c0_12] : memref<64x2xf32, #tpu.memory_space<vmem>>, vector<64x1xf32>
    %c0_13 = arith.constant 0 : index
    %c1 = arith.constant 1 : index
    %30 = vector.load %arg2[%c0_13, %c1] : memref<64x2xf32, #tpu.memory_space<vmem>>, vector<64x1xf32>
    %cst_14 = arith.constant 0.000000e+00 : f32
    %31 = vector.broadcast %cst_14 : f32 to vector<64x32xf32>
    %cst_15 = arith.constant 0.000000e+00 : f32
    %32 = vector.broadcast %cst_15 : f32 to vector<64x32xf32>
    %c128 = arith.constant 128 : index
    %c0_16 = arith.constant 0 : index
    %33 = vector.load %arg5[%c128, %c0_16] : memref<149x32xf32, #tpu.memory_space<vmem>>, vector<1x32xf32>
    %34 = vector.extract_strided_slice %28 {offsets = [0, 0], sizes = [64, 32], strides = [1, 1]} : vector<82x32xf32> to vector<64x32xf32>
    %35 = vector.broadcast %33 : vector<1x32xf32> to vector<64x32xf32>
    %36 = arith.mulf %34, %35 : vector<64x32xf32>
    %37 = arith.addf %32, %36 : vector<64x32xf32>
    %c131 = arith.constant 131 : index
    %c0_17 = arith.constant 0 : index
    %38 = vector.load %arg5[%c131, %c0_17] : memref<149x32xf32, #tpu.memory_space<vmem>>, vector<1x32xf32>
    %39 = vector.extract_strided_slice %28 {offsets = [8, 0], sizes = [64, 32], strides = [1, 1]} : vector<82x32xf32> to vector<64x32xf32>
    %40 = vector.broadcast %38 : vector<1x32xf32> to vector<64x32xf32>
    %41 = arith.mulf %39, %40 : vector<64x32xf32>
    %42 = arith.addf %37, %41 : vector<64x32xf32>
    %c134 = arith.constant 134 : index
    %c0_18 = arith.constant 0 : index
    %43 = vector.load %arg5[%c134, %c0_18] : memref<149x32xf32, #tpu.memory_space<vmem>>, vector<1x32xf32>
    %44 = vector.extract_strided_slice %28 {offsets = [16, 0], sizes = [64, 32], strides = [1, 1]} : vector<82x32xf32> to vector<64x32xf32>
    %45 = vector.broadcast %43 : vector<1x32xf32> to vector<64x32xf32>
    %46 = arith.mulf %44, %45 : vector<64x32xf32>
    %47 = arith.addf %42, %46 : vector<64x32xf32>
    %48 = vector.broadcast %29 : vector<64x1xf32> to vector<64x32xf32>
    %49 = arith.mulf %47, %48 : vector<64x32xf32>
    %50 = arith.addf %31, %49 : vector<64x32xf32>
    %cst_19 = arith.constant 0.000000e+00 : f32
    %51 = vector.broadcast %cst_19 : f32 to vector<64x32xf32>
    %c129 = arith.constant 129 : index
    %c0_20 = arith.constant 0 : index
    %52 = vector.load %arg5[%c129, %c0_20] : memref<149x32xf32, #tpu.memory_space<vmem>>, vector<1x32xf32>
    %53 = vector.extract_strided_slice %28 {offsets = [1, 0], sizes = [64, 32], strides = [1, 1]} : vector<82x32xf32> to vector<64x32xf32>
    %54 = vector.broadcast %52 : vector<1x32xf32> to vector<64x32xf32>
    %55 = arith.mulf %53, %54 : vector<64x32xf32>
    %56 = arith.addf %51, %55 : vector<64x32xf32>
    %c132 = arith.constant 132 : index
    %c0_21 = arith.constant 0 : index
    %57 = vector.load %arg5[%c132, %c0_21] : memref<149x32xf32, #tpu.memory_space<vmem>>, vector<1x32xf32>
    %58 = vector.extract_strided_slice %28 {offsets = [9, 0], sizes = [64, 32], strides = [1, 1]} : vector<82x32xf32> to vector<64x32xf32>
    %59 = vector.broadcast %57 : vector<1x32xf32> to vector<64x32xf32>
    %60 = arith.mulf %58, %59 : vector<64x32xf32>
    %61 = arith.addf %56, %60 : vector<64x32xf32>
    %c135 = arith.constant 135 : index
    %c0_22 = arith.constant 0 : index
    %62 = vector.load %arg5[%c135, %c0_22] : memref<149x32xf32, #tpu.memory_space<vmem>>, vector<1x32xf32>
    %63 = vector.extract_strided_slice %28 {offsets = [17, 0], sizes = [64, 32], strides = [1, 1]} : vector<82x32xf32> to vector<64x32xf32>
    %64 = vector.broadcast %62 : vector<1x32xf32> to vector<64x32xf32>
    %65 = arith.mulf %63, %64 : vector<64x32xf32>
    %66 = arith.addf %61, %65 : vector<64x32xf32>
    %67 = arith.addf %50, %66 : vector<64x32xf32>
    %cst_23 = arith.constant 0.000000e+00 : f32
    %68 = vector.broadcast %cst_23 : f32 to vector<64x32xf32>
    %c130 = arith.constant 130 : index
    %c0_24 = arith.constant 0 : index
    %69 = vector.load %arg5[%c130, %c0_24] : memref<149x32xf32, #tpu.memory_space<vmem>>, vector<1x32xf32>
    %70 = vector.extract_strided_slice %28 {offsets = [2, 0], sizes = [64, 32], strides = [1, 1]} : vector<82x32xf32> to vector<64x32xf32>
    %71 = vector.broadcast %69 : vector<1x32xf32> to vector<64x32xf32>
    %72 = arith.mulf %70, %71 : vector<64x32xf32>
    %73 = arith.addf %68, %72 : vector<64x32xf32>
    %c133 = arith.constant 133 : index
    %c0_25 = arith.constant 0 : index
    %74 = vector.load %arg5[%c133, %c0_25] : memref<149x32xf32, #tpu.memory_space<vmem>>, vector<1x32xf32>
    %75 = vector.extract_strided_slice %28 {offsets = [10, 0], sizes = [64, 32], strides = [1, 1]} : vector<82x32xf32> to vector<64x32xf32>
    %76 = vector.broadcast %74 : vector<1x32xf32> to vector<64x32xf32>
    %77 = arith.mulf %75, %76 : vector<64x32xf32>
    %78 = arith.addf %73, %77 : vector<64x32xf32>
    %c136 = arith.constant 136 : index
    %c0_26 = arith.constant 0 : index
    %79 = vector.load %arg5[%c136, %c0_26] : memref<149x32xf32, #tpu.memory_space<vmem>>, vector<1x32xf32>
    %80 = vector.extract_strided_slice %28 {offsets = [18, 0], sizes = [64, 32], strides = [1, 1]} : vector<82x32xf32> to vector<64x32xf32>
    %81 = vector.broadcast %79 : vector<1x32xf32> to vector<64x32xf32>
    %82 = arith.mulf %80, %81 : vector<64x32xf32>
    %83 = arith.addf %78, %82 : vector<64x32xf32>
    %84 = vector.broadcast %30 : vector<64x1xf32> to vector<64x32xf32>
    %85 = arith.mulf %83, %84 : vector<64x32xf32>
    %86 = arith.addf %67, %85 : vector<64x32xf32>
    %c137 = arith.constant 137 : index
    %c0_27 = arith.constant 0 : index
    %87 = vector.load %arg5[%c137, %c0_27] : memref<149x32xf32, #tpu.memory_space<vmem>>, vector<1x32xf32>
    %88 = vector.broadcast %87 : vector<1x32xf32> to vector<64x32xf32>
    %89 = arith.addf %86, %88 : vector<64x32xf32>
    %cst_28 = arith.constant 0.000000e+00 : f32
    %90 = vector.broadcast %cst_28 : f32 to vector<64x32xf32>
    %91 = arith.subf %90, %89 : vector<64x32xf32>
    %92 = math.exp %91 : vector<64x32xf32>
    %cst_29 = arith.constant 1.000000e+00 : f32
    %93 = vector.broadcast %cst_29 : f32 to vector<64x32xf32>
    %94 = arith.addf %93, %92 : vector<64x32xf32>
    %cst_30 = arith.constant 1.000000e+00 : f32
    %95 = vector.broadcast %cst_30 : f32 to vector<64x32xf32>
    %96 = arith.divf %95, %94 : vector<64x32xf32>
    %97 = arith.mulf %89, %96 : vector<64x32xf32>
    %98 = vector.extract_strided_slice %97 {offsets = [0, 0], sizes = [1, 32], strides = [1, 1]} : vector<64x32xf32> to vector<1x32xf32>
    %99 = vector.extract_strided_slice %97 {offsets = [63, 0], sizes = [1, 32], strides = [1, 1]} : vector<64x32xf32> to vector<1x32xf32>
    %c64 = arith.constant 64 : index
    %c0_31 = arith.constant 0 : index
    %100 = vector.load %arg5[%c64, %c0_31] : memref<149x32xf32, #tpu.memory_space<vmem>>, vector<16x32xf32>
    %c0_32 = arith.constant 0 : index
    %c0_33 = arith.constant 0 : index
    %101 = vector.load %arg5[%c0_32, %c0_33] : memref<149x32xf32, #tpu.memory_space<vmem>>, vector<16x32xf32>
    %102 = vector.broadcast %99 : vector<1x32xf32> to vector<16x32xf32>
    %103 = arith.mulf %100, %102 : vector<16x32xf32>
    %cst_34 = arith.constant dense<0.000000e+00> : vector<16xf32>
    %104 = vector.multi_reduction <add>, %103, %cst_34 [1] : vector<16x32xf32> to vector<16xf32>
    %105 = vector.shape_cast %104 : vector<16xf32> to vector<16x1xf32>
    %106 = vector.broadcast %105 : vector<16x1xf32> to vector<16x32xf32>
    %107 = arith.mulf %101, %106 : vector<16x32xf32>
    %cst_35 = arith.constant dense<0.000000e+00> : vector<32xf32>
    %108 = vector.multi_reduction <add>, %107, %cst_35 [0] : vector<16x32xf32> to vector<32xf32>
    %109 = vector.shape_cast %108 : vector<32xf32> to vector<1x32xf32>
    %c80 = arith.constant 80 : index
    %c0_36 = arith.constant 0 : index
    %110 = vector.load %arg5[%c80, %c0_36] : memref<149x32xf32, #tpu.memory_space<vmem>>, vector<16x32xf32>
    %c16 = arith.constant 16 : index
    %c0_37 = arith.constant 0 : index
    %111 = vector.load %arg5[%c16, %c0_37] : memref<149x32xf32, #tpu.memory_space<vmem>>, vector<16x32xf32>
    %112 = vector.broadcast %99 : vector<1x32xf32> to vector<16x32xf32>
    %113 = arith.mulf %110, %112 : vector<16x32xf32>
    %cst_38 = arith.constant dense<0.000000e+00> : vector<16xf32>
    %114 = vector.multi_reduction <add>, %113, %cst_38 [1] : vector<16x32xf32> to vector<16xf32>
    %115 = vector.shape_cast %114 : vector<16xf32> to vector<16x1xf32>
    %116 = vector.broadcast %115 : vector<16x1xf32> to vector<16x32xf32>
    %117 = arith.mulf %111, %116 : vector<16x32xf32>
    %cst_39 = arith.constant dense<0.000000e+00> : vector<32xf32>
    %118 = vector.multi_reduction <add>, %117, %cst_39 [0] : vector<16x32xf32> to vector<32xf32>
    %119 = vector.shape_cast %118 : vector<32xf32> to vector<1x32xf32>
    %c96 = arith.constant 96 : index
    %c0_40 = arith.constant 0 : index
    %120 = vector.load %arg5[%c96, %c0_40] : memref<149x32xf32, #tpu.memory_space<vmem>>, vector<16x32xf32>
    %c32_41 = arith.constant 32 : index
    %c0_42 = arith.constant 0 : index
    %121 = vector.load %arg5[%c32_41, %c0_42] : memref<149x32xf32, #tpu.memory_space<vmem>>, vector<16x32xf32>
    %122 = vector.broadcast %98 : vector<1x32xf32> to vector<16x32xf32>
    %123 = arith.mulf %120, %122 : vector<16x32xf32>
    %cst_43 = arith.constant dense<0.000000e+00> : vector<16xf32>
    %124 = vector.multi_reduction <add>, %123, %cst_43 [1] : vector<16x32xf32> to vector<16xf32>
    %125 = vector.shape_cast %124 : vector<16xf32> to vector<16x1xf32>
    %126 = vector.broadcast %125 : vector<16x1xf32> to vector<16x32xf32>
    %127 = arith.mulf %121, %126 : vector<16x32xf32>
    %cst_44 = arith.constant dense<0.000000e+00> : vector<32xf32>
    %128 = vector.multi_reduction <add>, %127, %cst_44 [0] : vector<16x32xf32> to vector<32xf32>
    %129 = vector.shape_cast %128 : vector<32xf32> to vector<1x32xf32>
    %c112 = arith.constant 112 : index
    %c0_45 = arith.constant 0 : index
    %130 = vector.load %arg5[%c112, %c0_45] : memref<149x32xf32, #tpu.memory_space<vmem>>, vector<16x32xf32>
    %c48 = arith.constant 48 : index
    %c0_46 = arith.constant 0 : index
    %131 = vector.load %arg5[%c48, %c0_46] : memref<149x32xf32, #tpu.memory_space<vmem>>, vector<16x32xf32>
    %132 = vector.broadcast %98 : vector<1x32xf32> to vector<16x32xf32>
    %133 = arith.mulf %130, %132 : vector<16x32xf32>
    %cst_47 = arith.constant dense<0.000000e+00> : vector<16xf32>
    %134 = vector.multi_reduction <add>, %133, %cst_47 [1] : vector<16x32xf32> to vector<16xf32>
    %135 = vector.shape_cast %134 : vector<16xf32> to vector<16x1xf32>
    %136 = vector.broadcast %135 : vector<16x1xf32> to vector<16x32xf32>
    %137 = arith.mulf %131, %136 : vector<16x32xf32>
    %cst_48 = arith.constant dense<0.000000e+00> : vector<32xf32>
    %138 = vector.multi_reduction <add>, %137, %cst_48 [0] : vector<16x32xf32> to vector<32xf32>
    %139 = vector.shape_cast %138 : vector<32xf32> to vector<1x32xf32>
    %140 = tpu.concatenate %109, %119, %129, %139 in 0 : vector<1x32xf32>, vector<1x32xf32>, vector<1x32xf32>, vector<1x32xf32> -> vector<4x32xf32>
    %cst_49 = arith.constant dense<0.000000e+00> : vector<64x4xf32>
    %141 = tpu.matmul %97, %140, %cst_49 {dimension_numbers = #tpu.dot_dimension_numbers<[1], [1], [0], [0], [0, 0, 1, 0], [], []>} : vector<64x32xf32>, vector<4x32xf32>, vector<64x4xf32> -> vector<64x4xf32>
    %c145 = arith.constant 145 : index
    %c0_50 = arith.constant 0 : index
    %142 = vector.load %arg5[%c145, %c0_50] : memref<149x32xf32, #tpu.memory_space<vmem>>, vector<4x32xf32>
    %cst_51 = arith.constant dense<0.000000e+00> : vector<64x4xf32>
    %143 = tpu.matmul %97, %142, %cst_51 {dimension_numbers = #tpu.dot_dimension_numbers<[1], [1], [0], [0], [0, 0, 1, 0], [], []>} : vector<64x32xf32>, vector<4x32xf32>, vector<64x4xf32> -> vector<64x4xf32>
    %144 = arith.mulf %141, %143 : vector<64x4xf32>
    %c138 = arith.constant 138 : index
    %c0_52 = arith.constant 0 : index
    %145 = vector.load %arg5[%c138, %c0_52] : memref<149x32xf32, #tpu.memory_space<vmem>>, vector<4x32xf32>
    %cst_53 = arith.constant dense<0.000000e+00> : vector<64x32xf32>
    %146 = tpu.matmul %144, %145, %cst_53 {dimension_numbers = #tpu.dot_dimension_numbers<[1], [0], [0], [1], [0, 0, 1, 1], [], []>} : vector<64x4xf32>, vector<4x32xf32>, vector<64x32xf32> -> vector<64x32xf32>
    %c142 = arith.constant 142 : index
    %c0_54 = arith.constant 0 : index
    %147 = vector.load %arg5[%c142, %c0_54] : memref<149x32xf32, #tpu.memory_space<vmem>>, vector<1x32xf32>
    %148 = vector.broadcast %147 : vector<1x32xf32> to vector<64x32xf32>
    %149 = arith.addf %146, %148 : vector<64x32xf32>
    %150 = arith.mulf %97, %149 : vector<64x32xf32>
    %cst_55 = arith.constant dense<0.000000e+00> : vector<64xf32>
    %151 = vector.multi_reduction <add>, %150, %cst_55 [1] : vector<64x32xf32> to vector<64xf32>
    %152 = vector.shape_cast %151 : vector<64xf32> to vector<64x1xf32>
    %cst_56 = arith.constant 3.200000e+01 : f32
    %153 = vector.broadcast %cst_56 : f32 to vector<64x1xf32>
    %154 = arith.divf %152, %153 : vector<64x1xf32>
    %155 = vector.broadcast %154 : vector<64x1xf32> to vector<64x32xf32>
    %156 = arith.subf %150, %155 : vector<64x32xf32>
    %157 = arith.mulf %156, %156 : vector<64x32xf32>
    %cst_57 = arith.constant dense<0.000000e+00> : vector<64xf32>
    %158 = vector.multi_reduction <add>, %157, %cst_57 [1] : vector<64x32xf32> to vector<64xf32>
    %159 = vector.shape_cast %158 : vector<64xf32> to vector<64x1xf32>
    %cst_58 = arith.constant 3.200000e+01 : f32
    %160 = vector.broadcast %cst_58 : f32 to vector<64x1xf32>
    %161 = arith.divf %159, %160 : vector<64x1xf32>
    %cst_59 = arith.constant 9.99999974E-6 : f32
    %162 = vector.broadcast %cst_59 : f32 to vector<64x1xf32>
    %163 = arith.addf %161, %162 : vector<64x1xf32>
    %164 = math.rsqrt %163 : vector<64x1xf32>
    %165 = vector.broadcast %164 : vector<64x1xf32> to vector<64x32xf32>
    %166 = arith.mulf %156, %165 : vector<64x32xf32>
    %c143 = arith.constant 143 : index
    %c0_60 = arith.constant 0 : index
    %167 = vector.load %arg5[%c143, %c0_60] : memref<149x32xf32, #tpu.memory_space<vmem>>, vector<1x32xf32>
    %168 = vector.broadcast %167 : vector<1x32xf32> to vector<64x32xf32>
    %169 = arith.mulf %166, %168 : vector<64x32xf32>
    %c144 = arith.constant 144 : index
    %c0_61 = arith.constant 0 : index
    %170 = vector.load %arg5[%c144, %c0_61] : memref<149x32xf32, #tpu.memory_space<vmem>>, vector<1x32xf32>
    %171 = vector.broadcast %170 : vector<1x32xf32> to vector<64x32xf32>
    %172 = arith.addf %169, %171 : vector<64x32xf32>
    %cst_62 = arith.constant 0.000000e+00 : f32
    %173 = vector.broadcast %cst_62 : f32 to vector<64x32xf32>
    %174 = arith.subf %173, %26 : vector<64x32xf32>
    %175 = math.exp %174 : vector<64x32xf32>
    %cst_63 = arith.constant 1.000000e+00 : f32
    %176 = vector.broadcast %cst_63 : f32 to vector<64x32xf32>
    %177 = arith.addf %176, %175 : vector<64x32xf32>
    %cst_64 = arith.constant 1.000000e+00 : f32
    %178 = vector.broadcast %cst_64 : f32 to vector<64x32xf32>
    %179 = arith.divf %178, %177 : vector<64x32xf32>
    %180 = arith.mulf %26, %179 : vector<64x32xf32>
    %181 = arith.mulf %172, %180 : vector<64x32xf32>
    %c0_65 = arith.constant 0 : index
    %c0_66 = arith.constant 0 : index
    %182 = vector.load %arg4[%c0_65, %c0_66] : memref<34x16xf32, #tpu.memory_space<vmem>>, vector<32x16xf32>
    %cst_67 = arith.constant dense<0.000000e+00> : vector<64x16xf32>
    %183 = tpu.matmul %181, %182, %cst_67 {dimension_numbers = #tpu.dot_dimension_numbers<[1], [0], [0], [1], [0, 0, 1, 1], [], []>} : vector<64x32xf32>, vector<32x16xf32>, vector<64x16xf32> -> vector<64x16xf32>
    %184 = arith.addf %0, %183 : vector<64x16xf32>
    %c0_68 = arith.constant 0 : index
    %c0_69 = arith.constant 0 : index
    %185 = vector.load %arg6[%c0_68, %c0_69] : memref<64x16xf32, #tpu.memory_space<vmem>>, vector<64x16xf32>
    tpu.vector_store %arg6[%c0_68, %c0_69], %184 {strides = array<i32>} : memref<64x16xf32, #tpu.memory_space<vmem>>, vector<64x16xf32>,
    return
  }
  func.func @transform_0(%arg0: i32) -> (i32, i32) {
    %c0_i32 = arith.constant 0 : i32
    %c0_i32_0 = arith.constant 0 : i32
    return %arg0, %c0_i32 : i32, i32
  }
  func.func @transform_1(%arg0: i32) -> (i32, i32) {
    %c0_i32 = arith.constant 0 : i32
    %c0_i32_0 = arith.constant 0 : i32
    %c0_i32_1 = arith.constant 0 : i32
    return %c0_i32, %c0_i32_0 : i32, i32
  }
  func.func @transform_2(%arg0: i32) -> (i32, i32) {
    %c0_i32 = arith.constant 0 : i32
    %c0_i32_0 = arith.constant 0 : i32
    %c0_i32_1 = arith.constant 0 : i32
    return %c0_i32, %c0_i32_0 : i32, i32
  }
  func.func @transform_3(%arg0: i32) -> (i32, i32) {
    %c0_i32 = arith.constant 0 : i32
    %c0_i32_0 = arith.constant 0 : i32
    %c0_i32_1 = arith.constant 0 : i32
    return %c0_i32, %c0_i32_0 : i32, i32
  }
  func.func @transform_4(%arg0: i32) -> (i32, i32) {
    %c0_i32 = arith.constant 0 : i32
    %c0_i32_0 = arith.constant 0 : i32
    %c0_i32_1 = arith.constant 0 : i32
    return %c0_i32, %c0_i32_0 : i32, i32
  }
  func.func @transform_5(%arg0: i32) -> (i32, i32) {
    %c0_i32 = arith.constant 0 : i32
    %c0_i32_0 = arith.constant 0 : i32
    return %arg0, %c0_i32 : i32, i32
  }
}

</mosaic_0001>

<bundles_post_ra>
// kernel: _lambda_.1
= control target key start
LH: loop header
LB: loop body
LE: loop exit
PB: predicated region body
PF: predicated region fallthrough
CT: control target
= control target key end

     0   :  { %10 = vsyncpa [#allocation3], 0  ;;  %s3530_s0 = inlined_call_operand.hbm [shape: f32[128,16], index: 0, kind: input, shape index: {}]   ;;  %s3531_s1 = inlined_call_operand.vmem [shape: f32[64,2], index: 1, kind: input, shape index: {}]   ;;  %s3532_s2 = inlined_call_operand.vmem [shape: f32[16,64], index: 2, kind: input, shape index: {}]   ;;  %s3533_s3 = inlined_call_operand.vmem [shape: f32[34,16], index: 3, kind: input, shape index: {}]   ;;  %s3534_s4 = inlined_call_operand.hbm [shape: f32[149,32], index: 4, kind: input, shape index: {}]   ;;  %s3535_s5 = inlined_call_operand.hbm [shape: f32[128,16], index: 5, kind: output, shape index: {}]  }
   0x1   :  { %12 = vsyncpa [#allocation3 + $0x1], 0 }
   0x2   :  { %13 = vsyncpa [#allocation6], 0 }
   0x3   :  { %14 = vsyncpa [#allocation4], 0 }
   0x4   :  { %16 = vsyncpa [#allocation4 + $0x1], 0  ;;  %s2581_s18 = smov 0   ;;  %s2583_s19 = smov 0  }
   0x5   :  { %s2585_s20 = smov 0   ;;  %s2587_s21 = smov 0  }
   0x6 LB: > { %s2602_s22 = sadd.s32 4294967295, %s2539_s21   ;;  %s2019_s23 = sadd.s32 4294967294, %s2539_s21   ;;  %s2539_s21 = sphi %s2587_s21, %s3599_s21   ;;  %s2535_s20 = sphi %s2585_s20, %s3598_s20   ;;  %s2531_s19 = sphi %s2583_s19, %s3597_s19   ;;  %s2527_s18 = sphi %s2581_s18, %s3596_s18  }
   0x7   : > { %p42_p0 = scmp.ne.s32.totalorder %s2531_s19, %s2527_s18  ;;  %p3536_p1 = scmp.eq.s32.totalorder %s2602_s22, 0 }
   0x8   : > { %p156_p3 = scmp.eq.s32.totalorder %s2019_s23, 1  ;;  %p2020_p5 = scmp.ge.s32.totalorder %s2539_s21, 1 }
   0x9   : > { %p2611_p4 = por %p3536_p1, %p42_p0  ;;  %p163_p7 = scmp.lt.s32.totalorder %s2539_s21, 3 }
   0xa   : > { %p2616_p6 = por %p156_p3, %p42_p0  ;;  %s2541_s27 = smov [#allocation5]  }
   0xb   : > { %s3559_s24 = scalar_select %p2611_p4, 1, 0 }
   0xc   : > { %s3560_s25 = scalar_select %p2616_p6, 1, 0 }
   0xd   : > { %p2621_p8 = pnand %p2020_p5, %p163_p7  ;;  %s184_s28 = sshll.u32 %s2541_s27, 4  ;;  %s2625_s28 = int_to_ptr.vmem [resolvable:$true] %s184_s28 }
   0xe   : > { %s2637_s30 = sadd.s32 1, %s2539_s21   ;;  %s29_s6 = sadd.s32 1, %s2535_s20 }
   0xf   : > { %s3561_s26 = scalar_select %p2621_p8, 1, 0 }
  0x10   : > { %p2244_p9 = pneg %p2621_p8  ;;  %s26_s7 = ssub.s32 %s2539_s21, %s2637_s30 }
  0x11   : > { %s2411_s10 = scalar_lea.hbm %s3534_s4, 2432 }
  0x12   : > { %p2632_p11 = pnand %p2244_p9, %p3536_p1  ;;  %p2412_p12 = scmp.ne.s32.totalorder %s3534_s4, %s2411_s10 }
  0x13   : > { %p2418_p5 = scmp.lt.u32.totalorder %s2411_s10, %s3534_s4 }
  0x14   : > { %p2413_p13 = pneg %p2632_p11 }
  0x16   : > { %p2414_p0 = pnand %p2413_p13, %p2412_p12 }
  0x18   : > { %p2415_p3 = pneg %p2414_p0 }
  0x1a   : > { %p2420_p7 = pnand %p2418_p5, %p2415_p3 }
  0x1c   : > { %2423 = shalt.err (!%p2420_p7)
}
  0x1d   : > { %s2424_s15 = scalar_lea.vmem %s2625_s28, 2432  ;;  %p2432_p2 = scmp.lt.s32.totalorder %s2625_s28, %s2625_s28 }
  0x1e   : > { %p2425_p9 = scmp.ne.s32.totalorder %s2625_s28, %s2424_s15  ;;  %p2433_p6 = scmp.lt.s32.totalorder %s2424_s15, %s2424_s15 }
  0x20   : > { %p2427_p10 = pnand %p2425_p9, %p2413_p13  ;;  %p2434_p4 = por %p2433_p6, %p2432_p2 }
  0x22   : > { %p2428_p1 = pneg %p2427_p10 }
  0x24   : > { %p2435_p8 = pnand %p2434_p4, %p2428_p1 }
  0x26   : > { %2438 = shalt.err (!%p2435_p8)
}
  0x27   : > { %s2542_s16 = smov 128   ;;  %s2543_s17 = smov 8  }
  0x28   : > { %2247 = dma.hbm_to_vmem [thread:$0]  (!%p2632_p11), %s3534_s4, 2432, %s2625_s28, [#allocation6], %s2542_s16, %s2542_s16, %s2543_s17  }
  0x29   : > { %p27_p1 = scmp.eq.s32.totalorder %s26_s7, 0  ;;  %p36_p2 = scmp.ne.s32.totalorder %s2535_s20, %s2531_s19 }
  0x2a   : > { %p37_p4 = scmp.eq.s32.totalorder %s2539_s21, 0  ;;  %p2257_p6 = scmp.lt.s32.totalorder %s2539_s21, 2 }
  0x2b   : > { %s2671_s8 = scalar_select %p27_p1, %s2535_s20, %s29_s6  }
  0x2c   : > { %p38_p8 = por %p37_p4, %p36_p2  ;;  %p3563_p10 = scmp.eq.s32.totalorder %s2602_s22, 1 }
  0x2d   : > { %s198_s29 = sand.u32 1, %s2535_s20   ;;  %s2093_s10 = sshll.u32 %s2539_s21, 10 }
  0x2e   : > { %p2675_p12 = por %p3563_p10, %p36_p2  ;;  %s2023_s11 = sshll.u32 %s198_s29, 6 }
  0x2f   : > { %s2684_s14 = scalar_lea.hbm %s3530_s0, %s2093_s10  ;;  %s202_s28 = scalar_lea.vmem [#allocation2], %s2023_s11 }
  0x30   : > { %s209_s6 = sshll.u32 %s202_s28, 4  ;;  %p2686_p11 = pnand %p2257_p6, %p38_p8  ;;  %s2690_s6 = int_to_ptr.vmem [resolvable:$true] %s209_s6 }
  0x31   : > { %s2692_s15 = scalar_lea.sflag [#allocation3], %s198_s29  ;;  %s2439_s23 = scalar_lea.hbm %s2684_s14, 1024 }
  0x32   : > { %p2440_p13 = scmp.ne.s32.totalorder %s2684_s14, %s2439_s23  ;;  %p2441_p0 = pneg %p2686_p11 }
  0x33   : > { %s2444_s11 = scalar_lea.hbm %s3530_s0, 2048  ;;  %p2445_p7 = scmp.lt.u32.totalorder %s2684_s14, %s3530_s0 }
  0x34   : > { %p2442_p3 = pnand %p2441_p0, %p2440_p13  ;;  %p2446_p9 = scmp.lt.u32.totalorder %s2444_s11, %s2439_s23 }
  0x35   : > { %p2448_p2 = scmp.lt.u32.totalorder %s2439_s23, %s2684_s14 }
  0x36   : > { %p2443_p5 = pneg %p2442_p3  ;;  %p2447_p1 = por %p2446_p9, %p2445_p7 }
  0x38   : > { %p2449_p4 = por %p2448_p2, %p2447_p1 }
  0x3a   : > { %p2450_p6 = pnand %p2449_p4, %p2443_p5 }
  0x3c   : > { %2453 = shalt.err (!%p2450_p6)
}
  0x3d   : > { %s2454_s29 = scalar_lea.vmem %s2690_s6, 1024  ;;  %s2544_s28 = smov [#allocation2]  }
  0x3e   : > { %p2455_p8 = scmp.ne.s32.totalorder %s2690_s6, %s2454_s29  ;;  %s2459_s27 = sshll.u32 %s2544_s28, 4  ;;  %s2460_s27 = int_to_ptr.vmem [resolvable:$false] %s2459_s27 }
  0x3f   : > { %s2461_s10 = scalar_lea.vmem %s2460_s27, 2048  ;;  %p2462_p3 = scmp.lt.s32.totalorder %s2690_s6, %s2460_s27 }
  0x40   : > { %p2457_p10 = pnand %p2455_p8, %p2441_p0  ;;  %p2463_p7 = scmp.lt.s32.totalorder %s2461_s10, %s2454_s29 }
  0x42   : > { %p2458_p13 = pneg %p2457_p10  ;;  %p2464_p9 = por %p2463_p7, %p2462_p3 }
  0x44   : > { %p2465_p1 = pnand %p2464_p9, %p2458_p13 }
  0x46   : > { %2468 = shalt.err (!%p2465_p1)
}
  0x47   : > { %2251 = dma.hbm_to_vmem [thread:$0]  (!%p2686_p11), %s2684_s14, 1024, %s2690_s6, %s2692_s15, %s2542_s16, %s2542_s16, %s2543_s17  }
  0x48   : > { %p3566_p0 = scmp.ne.s32.totalorder %s3561_s26, 0 }
  0x4a   : > { %221 = sbr.rel (%p3566_p0) target bundleno = 1906 (0x772), region = 40 }
  0x51   : > { %s2726_s23 = sand.u32 1, %s2531_s19   ;;  %p3567_p5 = scmp.ne.s32.totalorder %s3559_s24, 0 }
  0x52   : > { %s2027_s11 = sshll.u32 %s2726_s23, 6  ;;  %s224_s12 = scalar_lea.sflag [#allocation3], %s2726_s23 }
  0x53   : > { %s2732_s7 = scalar_lea.vmem [#allocation2], %s2027_s11 }
  0x54   : > { %2514 = dma.done.wait (%p3567_p5), %s224_s12, 1024  }
  0x55   : > { %2516 = vsyncadd (%p3567_p5), %s224_s12, 4294966272  ;;  %p3568_p11 = scmp.eq.s32.totalorder %s2602_s22, 0 }
  0x57   : > { %2518 = dma.done.wait (%p3568_p11), [#allocation6], 2432   ;;  %p3569_p2 = pmov %p3568_p11 }
  0x58   : > { %vm268_vm0 = vcmask 130048   ;;  %v264_v0 = vld [vmem:[%s2732_s7 + $0x20] sm:$0xff]  ;;  %v265_v1 = vld [vmem:[%s2732_s7 + $0x28] sm:$0xff]  ;;  %v266_v8 = vld [vmem:[%s2732_s7 + $0x30] sm:$0xff]  ;;  %v2545_v60 = vmov 1   ;;  %vm1054_vm1 = vcmask 261120  }
  0x59   : > { %2520 = vsyncadd (%p3569_p2), [#allocation6], 4294964864  ;;  %v260_v2 = vld [vmem:[%s2732_s7] sm:$0xff]  ;;  %v281_v3 = vsel %vm268_vm0, %v264_v0, 0.0  ;;  %v261_v5 = vld [vmem:[%s2732_s7 + $0x8] sm:$0xff]  ;;  %v284_v6 = vsel %vm268_vm0, %v265_v1, 0.0  ;;  %2301 = vset.pattern.permute.xlu1 %v2545_v60  ;;  %2300 = vset.pattern.permute.xlu0 %v2545_v60 }
  0x5a   : > { %v269_v4 = vsel %vm268_vm0, %v260_v2, 0.0  ;;  %282 = vadd.xlane.f32.xlu0 %v281_v3  ;;  %v272_v7 = vsel %vm268_vm0, %v261_v5, 0.0  ;;  %v267_v9 = vld [vmem:[%s2732_s7 + $0x38] sm:$0xff]  ;;  %v287_v10 = vsel %vm268_vm0, %v266_v8, 0.0  ;;  %v262_v12 = vld [vmem:[%s2732_s7 + $0x10] sm:$0xff]  ;;  %v400_v56 = vld [vmem:[%s3532_s2] sm:$0xff] }
  0x5b   : > { %270 = vadd.xlane.f32.xlu1 %v269_v4  ;;  %v290_v11 = vsel %vm268_vm0, %v267_v9, 0.0  ;;  %v263_v13 = vld [vmem:[%s2732_s7 + $0x18] sm:$0xff]  ;;  %v275_v14 = vsel %vm268_vm0, %v262_v12, 0.0  ;;  %v401_v57 = vld [vmem:[%s3532_s2 + $0x8] sm:$0xff]  ;;  %v2810_v61 = vld [vmem:[%s3531_s1 + $0x30] sm:$0xff]  ;;  %vm539_vm2 = vcmask 1040384  }
  0x5c   : > { %v278_v15 = vsel %vm268_vm0, %v263_v13, 0.0  ;;  %v2222_v58 = vpack.c.bf16 %v401_v57, %v400_v56  ;;  %v573_v59 = vld [vmem:[%s3531_s1 + $0x38] sm:$0xff]  ;;  %3570 = vst [vmem:[#allocation11_spill] sm:$0xff] %v2810_v61  ;;  %v566_v62 = vld [vmem:[%s3531_s1] sm:$0xff]  ;;  %v568_v3 = vld [vmem:[%s3531_s1 + $0x10] sm:$0xff]  ;;  %vm898_vm3 = vcmask 1041408  }
  0x5d   : > { %v570_v63 = vld [vmem:[%s3531_s1 + $0x20] sm:$0xff]  ;;  %v569_v4 = vld [vmem:[%s3531_s1 + $0x18] sm:$0xff]  ;;  %vm771_vm4 = vcmask 1046528   ;;  %vm941_vm5 = vcmask 1045504   ;;  %vm1147_vm6 = vcmask 1042432   ;;  %vm1429_vm7 = vcmask 1043456  }
  0x5e   : > { %285 = vadd.xlane.f32.xlu0 %v284_v6  ;;  %2234 = vmatprep.subr.bf16.mxu1 %v2222_v58  ;;  %vm1404_vm8 = vcmask 31744   ;;  %s2547_s10 = smov 96   ;;  %s257_s13 = scalar_lea.vmem [#allocation7], %s2027_s11 }
  0x5f   : > { %273 = vadd.xlane.f32.xlu1 %v272_v7  ;;  %2223 = vmatprep.subr.bf16.mxu0 %v2222_v58  ;;  %s2094_s11 = sshll.u32 %s2602_s22, 10  ;;  %s1936_s29 = sshll.u32 %s257_s13, 4  ;;  %s3483_s29 = int_to_ptr.vmem [resolvable:$true] %s1936_s29 }
  0x60   : > { %2235 = vmatpush3.bf16.msra.mxu1 %v2222_v58  ;;  %2225 = vmatpush3.bf16.msra.mxu0 %v2222_v58  ;;  %s1923_s22 = scalar_lea.sflag [#allocation4], %s2726_s23  ;;  %s2469_s12 = scalar_lea.vmem %s3483_s29, 1024 }
  0x61   : > { %p2470_p4 = scmp.ne.s32.totalorder %s3483_s29, %s2469_s12  ;;  %s2548_s24 = smov [#allocation7]  }
  0x62   : > { %288 = vadd.xlane.f32.xlu0 %v287_v10  ;;  %s2473_s26 = sshll.u32 %s2548_s24, 4  ;;  %s2474_s26 = int_to_ptr.vmem [resolvable:$false] %s2473_s26 }
  0x63   : > { %291 = vadd.xlane.f32.xlu1 %v290_v11  ;;  %p2471_p6 = pnand %p2470_p4, %p2675_p12  ;;  %s2475_s16 = scalar_lea.vmem %s2474_s26, 2048 }
  0x64   : > { %p2476_p10 = scmp.lt.s32.totalorder %s3483_s29, %s2474_s26  ;;  %p2477_p13 = scmp.lt.s32.totalorder %s2475_s16, %s2469_s12 }
  0x65   : > { %p2472_p8 = pneg %p2471_p6 }
  0x66   : > { %276 = vadd.xlane.f32.xlu0 %v275_v14  ;;  %p2478_p3 = por %p2477_p13, %p2476_p10 }
  0x67   : > { %279 = vadd.xlane.f32.xlu1 %v278_v15 }
  0x68   : > { %p2479_p7 = pnand %p2478_p3, %p2472_p8 }
  0xe7   : > { %v283_v16 = vpop.xlane.xlu0 %282 }
  0xe8   : > { %v271_v17 = vpop.xlane.xlu1 %270  ;;  %v298_v18 = vmul.f32 0.0625, %v283_v16 }
  0xe9   : > { %v294_v19 = vmul.f32 0.0625, %v271_v17 }
  0xea   : > { %v2758_v20 = vsub.f32 %v264_v0, %v298_v18  ;;  %v567_v0 = vld [vmem:[%s3531_s1 + $0x8] sm:$0xff] }
  0xeb   : > { %v2760_v21 = vsub.f32 %v260_v2, %v294_v19  ;;  %v286_v22 = vpop.xlane.xlu0 %285  ;;  %v2546_v2 = vmov 0  }
  0xec   : > { %v274_v23 = vpop.xlane.xlu1 %273  ;;  %v299_v24 = vmul.f32 0.0625, %v286_v22  ;;  %v314_v25 = vmul.f32 %v2758_v20, %v2758_v20 }
  0xed   : > { %v295_v26 = vmul.f32 0.0625, %v274_v23  ;;  %v310_v27 = vmul.f32 %v2760_v21, %v2760_v21 }
  0xee   : > { %v2766_v28 = vsub.f32 %v265_v1, %v299_v24  ;;  %v330_v29 = vsel %vm268_vm0, %v314_v25, 0.0  ;;  %v571_v1 = vld [vmem:[%s3531_s1 + $0x28] sm:$0xff] }
  0xef   : > { %v2769_v30 = vsub.f32 %v261_v5, %v295_v26  ;;  %v289_v31 = vpop.xlane.xlu0 %288  ;;  %331 = vadd.xlane.f32.xlu0 %v330_v29  ;;  %v318_v32 = vsel %vm268_vm0, %v310_v27, 0.0 }
  0xf0   : > { %v292_v33 = vpop.xlane.xlu1 %291  ;;  %v300_v34 = vmul.f32 0.0625, %v289_v31  ;;  %v315_v35 = vmul.f32 %v2766_v28, %v2766_v28  ;;  %v2030_v31 = vld [vmem:[%s3533_s3 + $0x20] ss:$0 sm:$0xff] }
  0xf1   : > { %v301_v36 = vmul.f32 0.0625, %v292_v33  ;;  %v311_v37 = vmul.f32 %v2769_v30, %v2769_v30 }
  0xf2   : > { %v2776_v38 = vsub.f32 %v266_v8, %v300_v34  ;;  %v333_v39 = vsel %vm268_vm0, %v315_v35, 0.0  ;;  %v2031_v35 = vld [vmem:[%s3533_s3 + $0x21] ss:$0 sm:$0xff] }
  0xf3   : > { %v2779_v40 = vsub.f32 %v267_v9, %v301_v36  ;;  %v277_v41 = vpop.xlane.xlu0 %276  ;;  %334 = vadd.xlane.f32.xlu1 %v333_v39  ;;  %319 = vadd.xlane.f32.xlu0 %v318_v32  ;;  %v321_v42 = vsel %vm268_vm0, %v311_v37, 0.0 }
  0xf4   : > { %v280_v43 = vpop.xlane.xlu1 %279  ;;  %v296_v44 = vmul.f32 0.0625, %v277_v41  ;;  %v316_v45 = vmul.f32 %v2776_v38, %v2776_v38 }
  0xf5   : > { %v297_v46 = vmul.f32 0.0625, %v280_v43  ;;  %v317_v47 = vmul.f32 %v2779_v40, %v2779_v40 }
  0xf6   : > { %v2786_v48 = vsub.f32 %v262_v12, %v296_v44  ;;  %v336_v49 = vsel %vm268_vm0, %v316_v45, 0.0 }
  0xf7   : > { %v2789_v50 = vsub.f32 %v263_v13, %v297_v46  ;;  %337 = vadd.xlane.f32.xlu0 %v336_v49  ;;  %322 = vadd.xlane.f32.xlu1 %v321_v42  ;;  %v339_v52 = vsel %vm268_vm0, %v317_v47, 0.0 }
  0xf8   : > { %v312_v51 = vmul.f32 %v2786_v48, %v2786_v48 }
  0xf9   : > { %v313_v53 = vmul.f32 %v2789_v50, %v2789_v50 }
  0xfa   : > { %v324_v54 = vsel %vm268_vm0, %v312_v51, 0.0 }
  0xfb   : > { %325 = vadd.xlane.f32.xlu0 %v324_v54  ;;  %340 = vadd.xlane.f32.xlu1 %v339_v52  ;;  %v327_v55 = vsel %vm268_vm0, %v313_v53, 0.0 }
  0xff   : > { %328 = vadd.xlane.f32.xlu1 %v327_v55 }
 0x110   : > { %896 = vperm.xlu1 %2301, %v573_v59  }
 0x111   : > { %893 = vperm.xlu0 %2300, %v2810_v61  }
 0x114   : > { %875 = vperm.xlu1 %2301, %v566_v62  }
 0x115   : > { %887 = vperm.xlu0 %2300, %v570_v63  }
 0x118   : > { %878 = vperm.xlu1 %2301, %v567_v0  }
 0x119   : > { %890 = vperm.xlu0 %2300, %v571_v1  }
 0x11c   : > { %2302 = vset.pattern.permute.xlu1 %v2546_v2 }
 0x11d   : > { %2305 = vset.pattern.permute.xlu0 %v2546_v2  ;;  %674 = vperm.xlu1 %2302, %v573_v59  }
 0x11e   : > { %659 = vperm.xlu0 %2305, %v570_v63  }
 0x121   : > { %639 = vperm.xlu1 %2302, %v566_v62  }
 0x122   : > { %2306 = vset.pattern.permute.xlu0 %v2545_v60 }
 0x125   : > { %2303 = vset.pattern.permute.xlu1 %v2545_v60 }
 0x126   : > { %881 = vperm.xlu1 %2303, %v568_v3  }
 0x12a   : > { %884 = vperm.xlu1 %2303, %v569_v4  }
 0x12e   : > { %2304 = vset.pattern.permute.xlu1 %v2546_v2 }
 0x12f   : > { %644 = vperm.xlu1 %2304, %v567_v0  }
 0x133   : > { %649 = vperm.xlu1 %2304, %v568_v3  }
 0x137   : > { %654 = vperm.xlu1 %2304, %v569_v4  }
 0x13b   : > { %664 = vperm.xlu1 %2304, %v571_v1  }
 0x17c   : > { %v332_v5 = vpop.xlane.xlu0 %331 }
 0x17d   : > { %v346_v6 = vmul.f32 0.0625, %v332_v5 }
 0x17f   : > { %v354_v7 = vadd.f32 1e-06, %v346_v6 }
 0x180   : > { %v320_v8 = vpop.xlane.xlu0 %319  ;;  %v335_v9 = vpop.xlane.xlu1 %334 }
 0x181   : > { %2307 = vrsqrt.f32 %v354_v7  ;;  %v342_v10 = vmul.f32 0.0625, %v320_v8  ;;  %v347_v11 = vmul.f32 0.0625, %v335_v9 }
 0x183   : > { %v350_v12 = vadd.f32 1e-06, %v342_v10  ;;  %v355_v13 = vadd.f32 1e-06, %v347_v11 }
 0x184   : > { %v338_v14 = vpop.xlane.xlu0 %337  ;;  %v323_v15 = vpop.xlane.xlu1 %322 }
 0x185   : > { %2309 = vrsqrt.f32 %v350_v12  ;;  %v348_v16 = vmul.f32 0.0625, %v338_v14  ;;  %v343_v17 = vmul.f32 0.0625, %v323_v15  ;;  %v2880_v14 = vld [vmem:[#allocation5 + $0x80] ss:$0 sm:$0xff]  ;;  %v2882_v15 = vld [vmem:[#allocation5 + $0x83] ss:$0 sm:$0xff] }
 0x186   : > { %2311 = vrsqrt.f32 %v355_v13 }
 0x187   : > { %v356_v18 = vadd.f32 1e-06, %v348_v16  ;;  %v351_v19 = vadd.f32 1e-06, %v343_v17  ;;  %v2884_v16 = vld [vmem:[#allocation5 + $0x81] ss:$0 sm:$0xff] }
 0x188   : > { %v326_v22 = vpop.xlane.xlu0 %325  ;;  %v341_v23 = vpop.xlane.xlu1 %340 }
 0x189   : > { %2313 = vrsqrt.f32 %v356_v18  ;;  %v344_v24 = vmul.f32 0.0625, %v326_v22  ;;  %v349_v25 = vmul.f32 0.0625, %v341_v23  ;;  %v2895_v22 = vld [vmem:[#allocation5 + $0x82] ss:$0 sm:$0xff] }
 0x18a   : > { %2315 = vrsqrt.f32 %v351_v19  ;;  %v698_v19 = vmul.f32 0.0, %v2884_v16 }
 0x18b   : > { %v2308_v26 = vpop.eup %2307  ;;  %v352_v27 = vadd.f32 1e-06, %v344_v24  ;;  %v357_v29 = vadd.f32 1e-06, %v349_v25 }
 0x18c   : > { %v329_v32 = vpop.xlane.xlu1 %328  ;;  %v370_v33 = vmul.f32 %v2308_v26, %v2758_v20  ;;  %v2903_v26 = vld [vmem:[#allocation5 + $0x84] ss:$0 sm:$0xff] }
 0x18d   : > { %2317 = vrsqrt.f32 %v352_v27  ;;  %v345_v34 = vmul.f32 0.0625, %v329_v32  ;;  %v810_v27 = vmul.f32 0.0, %v2895_v22 }
 0x18e   : > { %2319 = vrsqrt.f32 %v357_v29  ;;  %v383_v36 = vmul.f32 %v2030_v31, %v370_v33 }
 0x18f   : > { %v2310_v37 = vpop.eup %2309  ;;  %v353_v39 = vadd.f32 1e-06, %v345_v34 }
 0x190   : > { %v2312_v41 = vpop.eup %2311  ;;  %v396_v42 = vadd.f32 %v2031_v35, %v383_v36  ;;  %v366_v43 = vmul.f32 %v2310_v37, %v2760_v21  ;;  %v2855_v2 = vpop.permute.xlu1 %896  ;;  %v2920_v37 = vld [vmem:[#allocation5 + $0x87] ss:$0 sm:$0xff] }
 0x191   : > { %2321 = vrsqrt.f32 %v353_v39  ;;  %v371_v44 = vmul.f32 %v2312_v41, %v2766_v28  ;;  %3571 = vst [vmem:[#allocation12_spill] sm:$0xff] %v2855_v2 }
 0x192   : > { %2154 = vmatprep.mubr.msk.f32.mxu1 %vm268_vm0, %v396_v42  ;;  %v379_v20 = vmul.f32 %v2030_v31, %v366_v43 }
 0x193   : > { %v2314_v45 = vpop.eup %2313  ;;  %v384_v46 = vmul.f32 %v2030_v31, %v371_v44 }
 0x194   : > { %v2316_v47 = vpop.eup %2315  ;;  %v392_v49 = vadd.f32 %v2031_v35, %v379_v20  ;;  %v372_v51 = vmul.f32 %v2314_v45, %v2776_v38  ;;  %v2857_v3 = vpop.permute.xlu1 %875 }
 0x195   : > { %v397_v52 = vadd.f32 %v2031_v35, %v384_v46  ;;  %v367_v53 = vmul.f32 %v2316_v47, %v2769_v30  ;;  %v2934_v46 = vld [vmem:[#allocation5 + $0x88] ss:$0 sm:$0xff] }
 0x196   : > { %2148 = vmatprep.mubr.msk.f32.mxu0 %vm268_vm0, %v392_v49  ;;  %v385_v54 = vmul.f32 %v2030_v31, %v372_v51  ;;  %v2938_v49 = vpop.permute.xlu0 %893 }
 0x197   : > { %v2318_v55 = vpop.eup %2317  ;;  %2155 = vmatmul.mubr.msk.f32.vlgmr.msra.gmra.mrb[0].mxu1 %vm268_vm0, %v397_v52  ;;  %v380_v21 = vmul.f32 %v2030_v31, %v367_v53 }
 0x198   : > { %v2320_v28 = vpop.eup %2319  ;;  %v398_v56 = vadd.f32 %v2031_v35, %v385_v54  ;;  %v368_v57 = vmul.f32 %v2318_v55, %v2786_v48 }
 0x199   : > { %v393_v58 = vadd.f32 %v2031_v35, %v380_v21  ;;  %v373_v59 = vmul.f32 %v2320_v28, %v2779_v40  ;;  %v1281_v40 = vld [vmem:[#allocation5 + $0x91] sm:$0xf] }
 0x19a   : > { %2157 = vmatprep.mubr.msk.f32.mxu1 %vm268_vm0, %v398_v56  ;;  %v381_v38 = vmul.f32 %v2030_v31, %v368_v57  ;;  %2174 = vmatprep.subr.msk.mxu0 %vm1054_vm1, %v1281_v40 }
 0x19b   : > { %v2322_v60 = vpop.eup %2321  ;;  %2149 = vmatmul.mubr.msk.f32.vlgmr.msra.gmra.mrb[0].mxu0 %vm268_vm0, %v393_v58  ;;  %v386_v30 = vmul.f32 %v2030_v31, %v373_v59  ;;  %v3539_v58 = vrot.slane %v2855_v2, 6  ;;  %v3540_v59 = vrot.slane %v2857_v3, 6 }
 0x19c   : > { %v394_v62 = vadd.f32 %v2031_v35, %v381_v38  ;;  %v369_v63 = vmul.f32 %v2322_v60, %v2789_v50  ;;  %2175 = vmatpush3.xpose.msk.msra.mxu0 %vm1054_vm1, %v1281_v40  ;;  %v2859_v50 = vpop.permute.xlu1 %878 }
 0x19d   : > { %v399_v0 = vadd.f32 %v2031_v35, %v386_v30  ;;  %v900_v38 = vrot.slane %v2859_v50, 6  ;;  %v2954_v30 = vpop.permute.xlu0 %887 }
 0x19e   : > { %2151 = vmatprep.mubr.msk.f32.mxu0 %vm268_vm0, %v394_v62  ;;  %v382_v1 = vmul.f32 %v2030_v31, %v369_v63 }
 0x19f   : > { %2158 = vmatmul.mubr.msk.f32.gmra.mrb[2].mxu1 %vm268_vm0, %v399_v0 }
 0x1a0   : > { %v395_v48 = vadd.f32 %v2031_v35, %v382_v1  ;;  %v2867_v8 = vpop.permute.xlu1 %674  ;;  %v2916_v35 = vld [vmem:[#allocation5 + $0x85] ss:$0 sm:$0xff] }
 0x1a2   : > { %2152 = vmatmul.mubr.msk.f32.gmra.mrb[2].mxu0 %vm268_vm0, %v395_v48 }
 0x1a4   : > { %v2908_v31 = vpop.permute.xlu1 %639 }
 0x1a8   : > { %v882_v57 = vpop.permute.xlu1 %881 }
 0x1a9   : > { %v902_v60 = vrot.slane %v882_v57, 6 }
 0x1ac   : > { %v885_v57 = vpop.permute.xlu1 %884 }
 0x26a   : > { %v2861_v4 = vpop.f32.mrb[0].mxu1 }
 0x26b   : > { %3572 = vst [vmem:[#allocation13_spill] sm:$0xff] %v2861_v4  ;;  %v549_v5 = vrot.slane %v2861_v4, 7  ;;  %v2864_v6 = vpop.f32.mrb[1].mxu1 }
 0x26c   : > { %3573 = vst [vmem:[#allocation14_spill] sm:$0xff] %v2864_v6  ;;  %v547_v7 = vrot.slane %v2864_v6, 7 }
 0x26e   : > { %v2872_v9 = vsel %vm539_vm2, %v547_v7, %v549_v5  ;;  %v2874_v10 = vpop.f32.mrb[0].mxu0 }
 0x26f   : > { %3574 = vst [vmem:[#allocation15_spill] sm:$0xff] %v2874_v10  ;;  %v541_v11 = vrot.slane %v2874_v10, 7  ;;  %v2877_v12 = vpop.f32.mrb[1].mxu0 }
 0x270   : > { %3575 = vst [vmem:[#allocation16_spill] sm:$0xff] %v2877_v12  ;;  %v540_v13 = vrot.slane %v2877_v12, 7 }
 0x272   : > { %v2889_v17 = vsel %vm539_vm2, %v540_v13, %v541_v11  ;;  %v2892_v18 = vsel %vm539_vm2, 0.0, %v540_v13  ;;  %v2897_v23 = vpop.f32.mrb[2].mxu1 }
 0x273   : > { %3576 = vst [vmem:[#allocation17_spill] sm:$0xff] %v2897_v23  ;;  %v580_v24 = vmul.f32 %v2880_v14, %v2892_v18  ;;  %v601_v25 = vmul.f32 %v2882_v15, %v2889_v17  ;;  %v2906_v29 = vpop.f32.mrb[3].mxu1  ;;  %v699_v32 = vmul.f32 %v2884_v16, %v2892_v18  ;;  %v721_v33 = vmul.f32 %v2903_v26, %v2892_v18 }
 0x274   : > { %3577 = vst [vmem:[#allocation18_spill] sm:$0xff] %v2906_v29  ;;  %v722_v34 = vmul.f32 %v2903_v26, %v2889_v17  ;;  %v811_v39 = vmul.f32 %v2895_v22, %v2892_v18  ;;  %v833_v41 = vmul.f32 %v2916_v35, %v2892_v18  ;;  %v744_v20 = vmul.f32 %v2920_v37, %v2889_v17 }
 0x275   : > { %v2918_v36 = vadd.f32 %v601_v25, %v580_v24  ;;  %v2926_v42 = vpop.f32.mrb[2].mxu0  ;;  %v730_v43 = vadd.f32 %v721_v33, %v698_v19  ;;  %v834_v45 = vmul.f32 %v2916_v35, %v2889_v17  ;;  %v856_v52 = vmul.f32 %v2934_v46, %v2889_v17 }
 0x276   : > { %3578 = vst [vmem:[#allocation19_spill] sm:$0xff] %v2926_v42  ;;  %v2928_v44 = vadd.f32 %v722_v34, %v699_v32  ;;  %v2936_v47 = vpop.f32.mrb[3].mxu0  ;;  %v842_v51 = vadd.f32 %v833_v41, %v810_v27  ;;  %v553_v53 = vrot.slane %v2897_v23, 7  ;;  %v551_v21 = vrot.slane %v2906_v29, 7 }
 0x277   : > { %3579 = vst [vmem:[#allocation20_spill] sm:$0xff] %v2936_v47  ;;  %v2943_v54 = vadd.f32 %v744_v20, %v730_v43  ;;  %v2945_v55 = vadd.f32 %v834_v45, %v811_v39  ;;  %v545_v1 = vrot.slane %v2926_v42, 7  ;;  %v910_v19 = vrot.slane %v2938_v49, 6 }
 0x278   : > { %v2948_v28 = vadd.f32 %v856_v52, %v842_v51  ;;  %v565_v56 = vsel %vm539_vm2, %v553_v53, 0.0  ;;  %v2958_v63 = vsel %vm539_vm2, %v549_v5, %v551_v21  ;;  %v2961_v0 = vsel %vm539_vm2, %v551_v21, %v553_v53  ;;  %v2972_v5 = vld [vmem:[#allocation5 + $0x86] ss:$0 sm:$0xff]  ;;  %v891_v21 = vpop.permute.xlu0 %890 }
 0x279   : > { %v729_v62 = vmul.f32 %v2903_v26, %v565_v56  ;;  %v841_v48 = vmul.f32 %v2916_v35, %v565_v56  ;;  %v586_v40 = vmul.f32 %v2880_v14, %v2958_v63  ;;  %v607_v50 = vmul.f32 %v2882_v15, %v2961_v0 }
 0x27a   : > { %v705_v13 = vmul.f32 %v2884_v16, %v2958_v63  ;;  %v706_v24 = vmul.f32 %v2884_v16, %v2961_v0  ;;  %v728_v25 = vmul.f32 %v2903_v26, %v2961_v0  ;;  %v817_v27 = vmul.f32 %v2895_v22, %v2958_v63 }
 0x27b   : > { %v628_v32 = vmul.f32 %v2972_v5, %v565_v56  ;;  %v615_v33 = vadd.f32 %v607_v50, %v586_v40  ;;  %v818_v34 = vmul.f32 %v2895_v22, %v2961_v0  ;;  %v840_v39 = vmul.f32 %v2916_v35, %v2961_v0 }
 0x27c   : > { %v751_v41 = vmul.f32 %v2920_v37, %v565_v56  ;;  %v737_v43 = vadd.f32 %v728_v25, %v705_v13  ;;  %v2986_v20 = vadd.f32 %v729_v62, %v706_v24  ;;  %v2991_v45 = vsel %vm539_vm2, %v545_v1, %v547_v7 }
 0x27d   : > { %v863_v49 = vmul.f32 %v2934_v46, %v565_v56  ;;  %v2994_v51 = vadd.f32 %v628_v32, %v615_v33  ;;  %v849_v52 = vadd.f32 %v840_v39, %v817_v27  ;;  %v2996_v53 = vadd.f32 %v841_v48, %v818_v34 }
 0x27e   : > { %v2998_v40 = vadd.f32 %v751_v41, %v737_v43  ;;  %v543_v50 = vrot.slane %v2936_v47, 7  ;;  %v904_v62 = vrot.slane %v885_v57, 6  ;;  %v906_v24 = vrot.slane %v2954_v30, 6 }
 0x27f   : > { %v3001_v13 = vadd.f32 %v863_v49, %v849_v52  ;;  %v901_v7 = vsel %vm898_vm3, %v3540_v59, %v900_v38  ;;  %v908_v48 = vrot.slane %v891_v21, 6  ;;  %v903_v25 = vsel %vm898_vm3, %v900_v38, %v902_v60 }
 0x280   : > { %v3010_v56 = vsel %vm539_vm2, %v541_v11, %v543_v50  ;;  %v3016_v27 = vsel %vm898_vm3, %v910_v19, %v3539_v58  ;;  %v579_v32 = vmul.f32 0.0, %v2880_v14  ;;  %v3020_v30 = vsel %vm539_vm2, %v543_v50, %v545_v1 }
 0x281   : > { %v3023_v33 = vmul.f32 0.0, %v2920_v37  ;;  %v581_v11 = vmul.f32 %v2880_v14, %v2889_v17  ;;  %v602_v34 = vmul.f32 %v2882_v15, %v3010_v56  ;;  %v622_v38 = vmul.f32 %v2972_v5, %v3010_v56 }
 0x282   : > { %v905_v39 = vsel %vm898_vm3, %v902_v60, %v904_v62  ;;  %v3033_v41 = vmul.f32 0.0, %v2934_v46  ;;  %v3036_v1 = vsel %vm898_vm3, %v904_v62, %v906_v24  ;;  %v701_v43 = vmul.f32 %v2884_v16, %v3010_v56  ;;  %v645_v60 = vpop.permute.xlu1 %644 }
 0x283   : > { %v610_v49 = vadd.f32 %v602_v34, %v581_v11  ;;  %v623_v52 = vmul.f32 %v2972_v5, %v3020_v30  ;;  %v630_v21 = vadd.f32 %v622_v38, %v2918_v36  ;;  %v3044_v57 = vsel %vm898_vm3, %v908_v48, %v910_v19 }
 0x284   : > { %v700_v50 = vmul.f32 %v2884_v16, %v2889_v17  ;;  %v723_v62 = vmul.f32 %v2903_v26, %v3010_v56  ;;  %v724_v58 = vmul.f32 %v2903_v26, %v3020_v30  ;;  %v745_v11 = vmul.f32 %v2920_v37, %v3010_v56 }
 0x285   : > { %v631_v34 = vadd.f32 %v623_v52, %v610_v49  ;;  %v746_v36 = vmul.f32 %v2920_v37, %v3020_v30  ;;  %v816_v19 = vmul.f32 %v2895_v22, %v2872_v9  ;;  %v3059_v38 = vsel %vm898_vm3, %v906_v24, %v908_v48 }
 0x286   : > { %v732_v59 = vadd.f32 %v723_v62, %v700_v50  ;;  %v733_v23 = vadd.f32 %v724_v58, %v701_v43  ;;  %v747_v4 = vmul.f32 %v2920_v37, %v2991_v45  ;;  %v3064_v29 = vadd.f32 %v745_v11, %v2928_v44 }
 0x287   : > { %v812_v49 = vmul.f32 %v2895_v22, %v2889_v17  ;;  %v813_v52 = vmul.f32 %v2895_v22, %v3010_v56  ;;  %v835_v42 = vmul.f32 %v2916_v35, %v3010_v56  ;;  %v838_v24 = vmul.f32 %v2916_v35, %v2872_v9 }
 0x288   : > { %v600_v58 = vmul.f32 %v2882_v15, %v2892_v18  ;;  %v755_v48 = vadd.f32 %v746_v36, %v732_v59  ;;  %v3076_v43 = vadd.f32 %v747_v4, %v733_v23  ;;  %v836_v44 = vmul.f32 %v2916_v35, %v3020_v30  ;;  %v650_v23 = vpop.permute.xlu1 %649 }
 0x289   : > { %v844_v62 = vadd.f32 %v835_v42, %v812_v49  ;;  %v857_v11 = vmul.f32 %v2934_v46, %v3010_v56  ;;  %v858_v6 = vmul.f32 %v2934_v46, %v3020_v30  ;;  %v859_v4 = vmul.f32 %v2934_v46, %v2991_v45 }
 0x28a   : > { %v775_v12 = vrot.slane %v755_v48, 1  ;;  %v777_v47 = vrot.slane %v3076_v43, 1  ;;  %v845_v18 = vadd.f32 %v836_v44, %v813_v52  ;;  %v678_v59 = vmul.f32 %v645_v60, %v630_v21 }
 0x28b   : > { %v866_v36 = vadd.f32 %v857_v11, %v2945_v55  ;;  %v867_v50 = vadd.f32 %v858_v6, %v844_v62  ;;  %v679_v42 = vmul.f32 %v650_v23, %v631_v34  ;;  %v3580_v49 = vrot.slane %v3064_v29, 1 }
 0x28c   : > { %v778_v48 = vsel %vm771_vm4, %v775_v12, %v777_v47  ;;  %v868_v61 = vadd.f32 %v859_v4, %v845_v18  ;;  %v815_v52 = vmul.f32 %v2895_v22, %v2991_v45  ;;  %v748_v55 = vmul.f32 %v2920_v37, %v2872_v9 }
 0x28d   : > { %v776_v10 = vsel %vm771_vm4, %v3580_v49, %v775_v12  ;;  %v3097_v2 = vmul.f32 %v901_v7, %v866_v36  ;;  %v860_v6 = vmul.f32 %v2934_v46, %v2872_v9  ;;  %v925_v21 = vmul.f32 %v903_v25, %v867_v50 }
 0x28e   : > { %v798_v44 = vadd.f32 %v776_v10, %v678_v59  ;;  %v3103_v60 = vmul.f32 %v905_v39, %v868_v61  ;;  %v799_v34 = vadd.f32 %v778_v48, %v679_v42  ;;  %v605_v12 = vmul.f32 %v2882_v15, %v2872_v9  ;;  %v3135_v48 = vld [vmem:[#allocation5 + $0x89] ss:$0 sm:$0xff] }
 0x28f   : > { %v3107_v62 = vadd.f32 %v600_v58, %v579_v32  ;;  %v839_v10 = vmul.f32 %v2916_v35, %v2958_v63  ;;  %v847_v7 = vadd.f32 %v838_v24, %v815_v52  ;;  %v704_v11 = vmul.f32 %v2884_v16, %v2872_v9 }
 0x290   : > { %v943_v18 = vrot.slane %v3097_v2, 2  ;;  %v945_v4 = vrot.slane %v925_v21, 2  ;;  %v947_v25 = vrot.slane %v3103_v60, 2  ;;  %v861_v61 = vmul.f32 %v2934_v46, %v2958_v63 }
 0x291   : > { %v848_v39 = vadd.f32 %v839_v10, %v816_v19  ;;  %v862_v32 = vmul.f32 %v2934_v46, %v2961_v0  ;;  %v582_v58 = vmul.f32 %v2880_v14, %v3010_v56  ;;  %v603_v24 = vmul.f32 %v2882_v15, %v3020_v30 }
 0x292   : > { %v946_v50 = vsel %vm941_vm5, %v943_v18, %v945_v4  ;;  %v948_v23 = vsel %vm941_vm5, %v945_v4, %v947_v25  ;;  %v870_v59 = vadd.f32 %v861_v61, %v847_v7  ;;  %v624_v19 = vmul.f32 %v2972_v5, %v2991_v45  ;;  %v655_v7 = vpop.permute.xlu1 %654 }
 0x293   : > { %v968_v36 = vadd.f32 %v946_v50, %v798_v44  ;;  %v969_v46 = vadd.f32 %v948_v23, %v799_v34  ;;  %v871_v42 = vadd.f32 %v862_v32, %v848_v39  ;;  %v611_v49 = vadd.f32 %v603_v24, %v582_v58 }
 0x294   : > { %v3133_v56 = vadd.f32 %v3023_v33, %v2986_v20  ;;  %v702_v52 = vmul.f32 %v2884_v16, %v3020_v30  ;;  %v725_v21 = vmul.f32 %v2903_v26, %v2991_v45  ;;  %v814_v10 = vmul.f32 %v2895_v22, %v3020_v30 }
 0x295   : > { %v3144_v44 = vadd.f32 %v3135_v48, %v968_v36  ;;  %v3147_v34 = vadd.f32 %v3135_v48, %v969_v46  ;;  %v928_v20 = vmul.f32 %v3059_v38, %v870_v59  ;;  %v632_v33 = vadd.f32 %v624_v19, %v611_v49 }
 0x296   : > { %v3151_v4 = vmul.f32 %v3044_v57, %v871_v42  ;;  %v734_v61 = vadd.f32 %v725_v21, %v702_v52  ;;  %v837_v39 = vmul.f32 %v2916_v35, %v2991_v45  ;;  %v584_v22 = vmul.f32 %v2880_v14, %v2991_v45  ;;  %v665_v21 = vpop.permute.xlu1 %664 }
 0x297   : > { %v785_v32 = vrot.slane %v2998_v40, 1  ;;  %v3160_v58 = vadd.f32 %v3033_v41, %v2996_v53  ;;  %v989_v38 = vsub.f32 0.0, %v3144_v44  ;;  %v990_v24 = vsub.f32 0.0, %v3147_v34 }
 0x298   : > { %v787_v57 = vrot.slane %v3133_v56, 1  ;;  %v757_v50 = vadd.f32 %v748_v55, %v734_v61  ;;  %v846_v23 = vadd.f32 %v837_v39, %v814_v10  ;;  %v613_v59 = vadd.f32 %v605_v12, %v584_v22 }
 0x299   : > { %v951_v19 = vrot.slane %v928_v20, 2  ;;  %v680_v35 = vmul.f32 %v655_v7, %v632_v33  ;;  %v626_v36 = vmul.f32 %v2972_v5, %v2958_v63  ;;  %v703_v46 = vmul.f32 %v2884_v16, %v2991_v45 }
 0x29a   : > { %v953_v53 = vrot.slane %v3151_v4, 2  ;;  %v779_v41 = vrot.slane %v757_v50, 1  ;;  %v869_v42 = vadd.f32 %v860_v6, %v846_v23  ;;  %v726_v49 = vmul.f32 %v2903_v26, %v2872_v9 }
 0x29b   : > { %v998_v52 = vmul.f32 1.442695, %v989_v38  ;;  %v1000_v56 = vmul.f32 1.442695, %v990_v24  ;;  %v634_v55 = vadd.f32 %v626_v36, %v613_v59  ;;  %v727_v12 = vmul.f32 %v2903_v26, %v2958_v63 }
 0x29c   : > { %v780_v10 = vsel %vm771_vm4, %v777_v47, %v779_v41  ;;  %v927_v16 = vmul.f32 %v3036_v1, %v869_v42  ;;  %v735_v20 = vadd.f32 %v726_v49, %v703_v46  ;;  %v749_v6 = vmul.f32 %v2920_v37, %v2958_v63  ;;  %v660_v46 = vpop.permute.xlu0 %659 }
 0x29d   : > { %v800_v33 = vadd.f32 %v780_v10, %v680_v35  ;;  %v736_v7 = vadd.f32 %v727_v12, %v704_v11  ;;  %v750_v61 = vmul.f32 %v2920_v37, %v2961_v0  ;;  %v954_v26 = vsel %vm941_vm5, %v951_v19, %v953_v53 }
 0x29e   : > { %v949_v39 = vrot.slane %v927_v16, 2  ;;  %v758_v22 = vadd.f32 %v749_v6, %v735_v20  ;;  %v682_v43 = vmul.f32 %v665_v21, %v634_v55  ;;  %v583_v47 = vmul.f32 %v2880_v14, %v3020_v30 }
 0x29f   : > { %v759_v1 = vadd.f32 %v750_v61, %v736_v7  ;;  %v604_v38 = vmul.f32 %v2882_v15, %v2991_v45  ;;  %v625_v11 = vmul.f32 %v2972_v5, %v2872_v9  ;;  %v621_v37 = vmul.f32 %v2972_v5, %v2889_v17 }
 0x2a0   : > { %v950_v24 = vsel %vm941_vm5, %v947_v25, %v949_v39  ;;  %v781_v50 = vrot.slane %v758_v22, 1  ;;  %v952_v23 = vsel %vm941_vm5, %v949_v39, %v951_v19  ;;  %v772_v59 = vrot.slane %v2943_v54, 1 }
 0x2a1   : > { %v970_v30 = vadd.f32 %v950_v24, %v800_v33  ;;  %v783_v35 = vrot.slane %v759_v1, 1  ;;  %v612_v36 = vadd.f32 %v604_v38, %v583_v47  ;;  %v629_v45 = vadd.f32 %v621_v37, %v3107_v62 }
 0x2a2   : > { %v782_v42 = vsel %vm771_vm4, %v779_v41, %v781_v50  ;;  %v3581_v49 = vrot.slane %v3064_v29, 1  ;;  %v3582_v60 = vrot.slane %v2857_v3, 6  ;;  %v684_v19 = vmul.f32 %v2867_v8, %v2994_v51 }
 0x2a3   : > { %v3209_v54 = vadd.f32 %v3135_v48, %v970_v30  ;;  %v784_v55 = vsel %vm771_vm4, %v781_v50, %v783_v35  ;;  %v633_v62 = vadd.f32 %v625_v11, %v612_v36  ;;  %v677_v12 = vmul.f32 %v2908_v31, %v629_v45  ;;  %v3583_v31 = vld [vmem:[#allocation12_spill] sm:$0xff] }
 0x2a4   : > { %v774_v17 = vsel %vm771_vm4, %v772_v59, %v3581_v49  ;;  %v923_v25 = vmul.f32 %v3582_v60, %v2948_v28  ;;  %v802_v41 = vadd.f32 %v784_v55, %v682_v43  ;;  %v788_v29 = vsel %vm771_vm4, %v785_v32, %v787_v57 }
 0x2a5   : > { %v930_v3 = vmul.f32 %v3016_v27, %v3001_v13  ;;  %v991_v28 = vsub.f32 0.0, %v3209_v54  ;;  %v681_v8 = vmul.f32 %v660_v46, %v633_v62  ;;  %v797_v51 = vadd.f32 %v774_v17, %v677_v12 }
 0x2a6   : > { %v942_v21 = vrot.slane %v923_v25, 2  ;;  %v804_v10 = vadd.f32 %v788_v29, %v684_v19  ;;  %v972_v16 = vadd.f32 %v954_v26, %v802_v41  ;;  %v3584_v6 = vrot.slane %v3583_v31, 6  ;;  %v1044_v31 = vld [vmem:[#allocation5 + $0x40] sm:$0xff] }
 0x2a7   : > { %v801_v7 = vadd.f32 %v782_v42, %v681_v8  ;;  %2323 = vpow2.f32 %v998_v52  ;;  %v955_v13 = vrot.slane %v930_v3, 2  ;;  %v1002_v39 = vmul.f32 1.442695, %v991_v28  ;;  %v1095_v28 = vld [vmem:[#allocation5 + $0x60] sm:$0xff] }
 0x2a8   : > { %v944_v20 = vsel %vm941_vm5, %v942_v21, %v943_v18  ;;  %v931_v33 = vmul.f32 %v3584_v6, %v3160_v58  ;;  %v3226_v57 = vadd.f32 %v3135_v48, %v972_v16  ;;  %2325 = vpow2.f32 %v1000_v56 }
 0x2a9   : > { %v967_v61 = vadd.f32 %v944_v20, %v797_v51  ;;  %v971_v22 = vadd.f32 %v952_v23, %v801_v7  ;;  %v585_v58 = vmul.f32 %v2880_v14, %v2872_v9  ;;  %v606_v52 = vmul.f32 %v2882_v15, %v2958_v63 }
 0x2aa   : > { %v957_v27 = vrot.slane %v931_v33, 2  ;;  %v993_v2 = vsub.f32 0.0, %v3226_v57  ;;  %v627_v56 = vmul.f32 %v2972_v5, %v2961_v0  ;;  %v3243_v11 = vsel %vm771_vm4, %v783_v35, %v785_v32 }
 0x2ab   : > { %v980_v26 = vadd.f32 %v3135_v48, %v967_v61  ;;  %v3236_v43 = vadd.f32 %v3135_v48, %v971_v22  ;;  %v614_v38 = vadd.f32 %v606_v52, %v585_v58  ;;  %v3248_v9 = vsel %vm941_vm5, %v953_v53, %v955_v13  ;;  %v1122_v22 = vld [vmem:[#allocation5 + $0x70] sm:$0xff] }
 0x2ac   : > { %v958_v18 = vsel %vm941_vm5, %v955_v13, %v957_v27  ;;  %2327 = vpow2.f32 %v1002_v39  ;;  %v1006_v37 = vmul.f32 1.442695, %v993_v2  ;;  %v1048_v60 = vlaneseq  ;;  %v1072_v39 = vld [vmem:[#allocation5 + $0x50] sm:$0xff] }
 0x2ad   : > { %v988_v47 = vsub.f32 0.0, %v980_v26  ;;  %v974_v1 = vadd.f32 %v958_v18, %v804_v10  ;;  %v992_v14 = vsub.f32 0.0, %v3236_v43  ;;  %v3252_v24 = vadd.f32 %v627_v56, %v614_v38 }
 0x2ae   : > { %v1049_v19 = vshrl.u32 %v1048_v60, 7  ;;  %v1074_v60 = vld [vmem:[#allocation5 + $0x10] sm:$0xff] }
 0x2af   : > { %v996_v15 = vmul.f32 1.442695, %v988_v47  ;;  %v987_v63 = vadd.f32 %v3135_v48, %v974_v1  ;;  %v1004_v0 = vmul.f32 1.442695, %v992_v14 }
 0x2b0   : > { %v1101_v62 = vsub.s32 0, %v1049_v19  ;;  %v1050_v51 = vsub.s32 7, %v1049_v19 }
 0x2b1   : > { %2329 = vpow2.f32 %v996_v15  ;;  %v995_v5 = vsub.f32 0.0, %v987_v63  ;;  %v2324_v32 = vpop.eup %2323  ;;  %v1123_v15 = vld [vmem:[#allocation5 + $0x78] sm:$0xff] }
 0x2b2   : > { %2331 = vpow2.f32 %v1004_v0  ;;  %v2326_v4 = vpop.eup %2325  ;;  %v1013_v53 = vadd.f32 1.0, %v2324_v32  ;;  %v1098_v32 = vld [vmem:[#allocation5 + $0x28] sm:$0xff] }
 0x2b3   : > { %v1010_v40 = vmul.f32 1.442695, %v995_v5  ;;  %2333 = vpow2.f32 %v1006_v37  ;;  %v1014_v50 = vadd.f32 1.0, %v2326_v4  ;;  %v3585_v5 = vld [vmem:[#allocation11_spill] sm:$0xff]  ;;  %v1097_v4 = vld [vmem:[#allocation5 + $0x20] sm:$0xff] }
 0x2b5   : > { %2335 = vpow2.f32 %v1010_v40 }
 0x2b6   : > { %v2328_v23 = vpop.eup %2327  ;;  %2337 = vrcp.f32 %v1013_v53 }
 0x2b7   : > { %2339 = vrcp.f32 %v1014_v50  ;;  %v1015_v30 = vadd.f32 1.0, %v2328_v23 }
 0x2bb   : > { %v2330_v59 = vpop.eup %2329 }
 0x2bc   : > { %v1012_v35 = vadd.f32 1.0, %v2330_v59  ;;  %v2332_v36 = vpop.eup %2331 }
 0x2bd   : > { %v2334_v45 = vpop.eup %2333  ;;  %v1016_v46 = vadd.f32 1.0, %v2332_v36 }
 0x2be   : > { %2341 = vrcp.f32 %v1012_v35  ;;  %v1017_v17 = vadd.f32 1.0, %v2334_v45 }
 0x2bf   : > { %v2336_v42 = vpop.eup %2335  ;;  %2343 = vrcp.f32 %v1015_v30  ;;  %v1046_v30 = vld [vmem:[#allocation5] sm:$0xff] }
 0x2c0   : > { %v1019_v49 = vadd.f32 1.0, %v2336_v42  ;;  %2345 = vrcp.f32 %v1016_v46  ;;  %v2338_v25 = vpop.eup %2337 }
 0x2c1   : > { %v2340_v55 = vpop.eup %2339  ;;  %v3255_v41 = vmul.f32 %v2338_v25, %v3144_v44  ;;  %v1096_v44 = vld [vmem:[#allocation5 + $0x68] sm:$0xff] }
 0x2c2   : > { %2347 = vrcp.f32 %v1019_v49  ;;  %v3260_v29 = vmul.f32 %v2340_v55, %v3147_v34  ;;  %v1047_v49 = vld [vmem:[#allocation5 + $0x8] sm:$0xff] }
 0x2c3   : > { %2349 = vrcp.f32 %v1017_v17 }
 0x2c8   : > { %v2342_v12 = vpop.eup %2341 }
 0x2c9   : > { %v3257_v21 = vmul.f32 %v2342_v12, %v980_v26  ;;  %v2344_v3 = vpop.eup %2343 }
 0x2ca   : > { %v2346_v8 = vpop.eup %2345  ;;  %v3274_v6 = vmul.f32 %v2344_v3, %v3209_v54  ;;  %v1075_v3 = vld [vmem:[#allocation5 + $0x18] sm:$0xff] }
 0x2cb   : > { %2162 = vmatprep.mubr.msk.f32.mxu1 %vm1054_vm1, %v3257_v21  ;;  %2176 = vmatprep.mubr.msk.f32.mxu0 %vm1054_vm1, %v3257_v21  ;;  %v1102_v10 = vrot.slane %v3257_v21, %v1101_v62  ;;  %v3279_v13 = vmul.f32 %v2346_v8, %v3236_v43  ;;  %v1045_v43 = vld [vmem:[#allocation5 + $0x48] sm:$0xff] }
 0x2cc   : > { %v2348_v16 = vpop.eup %2347  ;;  %2177 = vmatmul.mubr.msk.f32.vlgmr.msra.gmra.mrb[4].mxu0 %vm1054_vm1, %v3255_v41 }
 0x2cd   : > { %v3269_v20 = vmul.f32 %v2348_v16, %v987_v63  ;;  %2179 = vmatprep.mubr.msk.f32.mxu0 %vm1054_vm1, %v3260_v29  ;;  %v1103_v34 = vmul.f32 %v1102_v10, %v1095_v28  ;;  %v2350_v33 = vpop.eup %2349  ;;  %v1104_v27 = vmul.f32 %v1102_v10, %v1096_v44  ;;  %v1126_v52 = vmul.f32 %v1122_v22, %v1102_v10 }
 0x2ce   : > { %v3286_v54 = vmul.f32 %v2350_v33, %v3226_v57  ;;  %v1073_v57 = vld [vmem:[#allocation5 + $0x58] sm:$0xff]  ;;  %v1127_v37 = vmul.f32 %v1123_v15, %v1102_v10  ;;  %v1124_v10 = vld [vmem:[#allocation5 + $0x30] sm:$0xff] }
 0x2cf   : > { %v1051_v7 = vrot.slane %v3269_v20, %v1050_v51  ;;  %v1105_v61 = vsel %vm1054_vm1, %v1103_v34, 0.0  ;;  %v1108_v58 = vsel %vm1054_vm1, %v1104_v27, 0.0  ;;  %v1128_v1 = vsel %vm1054_vm1, %v1126_v52, 0.0  ;;  %v1125_v27 = vld [vmem:[#allocation5 + $0x38] sm:$0xff] }
 0x2d0   : > { %1106 = vadd.xlane.f32.xlu0 %v1105_v61  ;;  %2180 = vmatmul.mubr.msk.f32.gmra.mrb[6].mxu0 %vm1054_vm1, %v3274_v6  ;;  %v1131_v0 = vsel %vm1054_vm1, %v1127_v37, 0.0 }
 0x2d1   : > { %v1052_v26 = vmul.f32 %v1051_v7, %v1044_v31  ;;  %2182 = vmatprep.mubr.msk.f32.mxu0 %vm1054_vm1, %v3279_v13  ;;  %v1076_v18 = vmul.f32 %v1072_v39, %v1051_v7  ;;  %v1053_v56 = vmul.f32 %v1051_v7, %v1045_v43  ;;  %v1077_v14 = vmul.f32 %v1073_v57, %v1051_v7 }
 0x2d3   : > { %v1055_v2 = vsel %vm1054_vm1, %v1052_v26, 0.0  ;;  %v1078_v47 = vsel %vm1054_vm1, %v1076_v18, 0.0  ;;  %v1058_v38 = vsel %vm1054_vm1, %v1053_v56, 0.0  ;;  %v1081_v63 = vsel %vm1054_vm1, %v1077_v14, 0.0 }
 0x2d4   : > { %1056 = vadd.xlane.f32.xlu1 %v1055_v2  ;;  %1109 = vadd.xlane.f32.xlu0 %v1108_v58 }
 0x2d5   : > { %2183 = vmatmul.mubr.msk.f32.gmra.mrb[8].mxu0 %vm1054_vm1, %v3286_v54 }
 0x2d8   : > { %1079 = vadd.xlane.f32.xlu1 %v1078_v47  ;;  %1129 = vadd.xlane.f32.xlu0 %v1128_v1 }
 0x2dc   : > { %1059 = vadd.xlane.f32.xlu0 %v1058_v38 }
 0x2e0   : > { %1082 = vadd.xlane.f32.xlu0 %v1081_v63 }
 0x2e4   : > { %1132 = vadd.xlane.f32.xlu0 %v1131_v0 }
 0x2e9   : > { %669 = vperm.xlu1 %2304, %v3585_v5  }
 0x35d   : > { %v1107_v40 = vpop.xlane.xlu0 %1106 }
 0x35e   : > { %v1111_v59 = vmul.f32 %v1107_v40, %v1097_v4 }
 0x360   : > { %v1113_v42 = vsel %vm1054_vm1, %v1111_v59, 0.0 }
 0x361   : > { %v1057_v53 = vpop.xlane.xlu1 %1056  ;;  %v1110_v50 = vpop.xlane.xlu0 %1109 }
 0x362   : > { %v1112_v23 = vmul.f32 %v1110_v50, %v1098_v32  ;;  %v1061_v46 = vmul.f32 %v1057_v53, %v1046_v30 }
 0x364   : > { %v1114_v36 = vsel %vm1054_vm1, %v1112_v23, 0.0  ;;  %v1063_v12 = vsel %vm1054_vm1, %v1061_v46, 0.0 }
 0x365   : > { %v1080_v35 = vpop.xlane.xlu1 %1079  ;;  %v1130_v45 = vpop.xlane.xlu0 %1129  ;;  %v1115_v17 = vadd.f32 %v1114_v36, %v1113_v42 }
 0x366   : > { %v1084_v28 = vmul.f32 %v1080_v35, %v1074_v60  ;;  %v1134_v7 = vmul.f32 %v1130_v45, %v1124_v10  ;;  %v1398_v60 = vld [vmem:[#allocation5 + $0x8a] sm:$0xf] }
 0x367   : > { %v1116_v8 = vrot.slane %v1115_v17, 4 }
 0x368   : > { %v1136_v56 = vsel %vm1054_vm1, %v1134_v7, 0.0 }
 0x369   : > { %v670_v25 = vpop.permute.xlu1 %669  ;;  %v1060_v19 = vpop.xlane.xlu0 %1059  ;;  %v1117_v39 = vadd.f32 %v1116_v8, %v1115_v17 }
 0x36a   : > { %v683_v55 = vmul.f32 %v670_v25, %v3252_v24  ;;  %v1062_v62 = vmul.f32 %v1060_v19, %v1047_v49  ;;  %v1086_v24 = vsel %vm1054_vm1, %v1084_v28, 0.0 }
 0x36b   : > { %v1118_v1 = vrot.slane %v1117_v39, 2 }
 0x36c   : > { %v803_v51 = vadd.f32 %v3243_v11, %v683_v55  ;;  %v1064_v16 = vsel %vm1054_vm1, %v1062_v62, 0.0 }
 0x36d   : > { %v1065_v44 = vadd.f32 %v1064_v16, %v1063_v12  ;;  %v1083_v34 = vpop.xlane.xlu0 %1082  ;;  %v1119_v37 = vadd.f32 %v1118_v1, %v1117_v39  ;;  %v3587_v1 = vld [vmem:[#allocation20_spill] sm:$0xff] }
 0x36e   : > { %v973_v31 = vadd.f32 %v3248_v9, %v803_v51  ;;  %v1085_v33 = vmul.f32 %v1083_v34, %v1075_v3 }
 0x36f   : > { %v1066_v61 = vrot.slane %v1065_v44, 4  ;;  %v1120_v53 = vrot.slane %v1119_v37, 1 }
 0x370   : > { %v986_v22 = vadd.f32 %v3135_v48, %v973_v31  ;;  %v1087_v26 = vsel %vm1054_vm1, %v1085_v33, 0.0 }
 0x371   : > { %v1067_v2 = vadd.f32 %v1066_v61, %v1065_v44  ;;  %v1088_v11 = vadd.f32 %v1087_v26, %v1086_v24  ;;  %v1133_v18 = vpop.xlane.xlu0 %1132  ;;  %v1121_v45 = vadd.f32 %v1120_v53, %v1119_v37 }
 0x372   : > { %v994_v58 = vsub.f32 0.0, %v986_v22  ;;  %v1135_v52 = vmul.f32 %v1133_v18, %v1125_v27 }
 0x373   : > { %v1068_v43 = vrot.slane %v1067_v2, 2  ;;  %v1089_v47 = vrot.slane %v1088_v11, 4 }
 0x374   : > { %v1008_v9 = vmul.f32 1.442695, %v994_v58  ;;  %v1137_v57 = vsel %vm1054_vm1, %v1135_v52, 0.0  ;;  %v3586_v52 = vld [vmem:[#allocation15_spill] sm:$0xff] }
 0x375   : > { %v1069_v38 = vadd.f32 %v1068_v43, %v1067_v2  ;;  %v1090_v14 = vadd.f32 %v1089_v47, %v1088_v11  ;;  %v1138_v15 = vadd.f32 %v1137_v57, %v1136_v56  ;;  %v1678_v43 = vsub.f32 0.0, %v3586_v52  ;;  %v2068_v57 = vld [vmem:[#allocation5 + $0x8e] ss:$0 sm:$0xff] }
 0x376   : > { %2351 = vpow2.f32 %v1008_v9  ;;  %v1679_v9 = vsub.f32 0.0, %v3587_v1 }
 0x377   : > { %v1091_v48 = vrot.slane %v1090_v14, 2  ;;  %v1139_v63 = vrot.slane %v1138_v15, 4  ;;  %v1070_v0 = vrot.slane %v1069_v38, 1  ;;  %v1687_v47 = vmul.f32 1.442695, %v1678_v43 }
 0x378   : > { %v1689_v56 = vmul.f32 1.442695, %v1679_v9 }
 0x379   : > { %v1092_v5 = vadd.f32 %v1091_v48, %v1090_v14  ;;  %v1140_v40 = vadd.f32 %v1139_v63, %v1138_v15  ;;  %v1071_v50 = vadd.f32 %v1070_v0, %v1069_v38 }
 0x37b   : > { %v1093_v32 = vrot.slane %v1092_v5, 1  ;;  %v1141_v4 = vrot.slane %v1140_v40, 2 }
 0x37d   : > { %v1094_v23 = vadd.f32 %v1093_v32, %v1092_v5  ;;  %v1142_v59 = vadd.f32 %v1141_v4, %v1140_v40 }
 0x37f   : > { %v1143_v30 = vrot.slane %v1142_v59, 1  ;;  %v1145_v35 = vsel %vm539_vm2, %v1071_v50, %v1094_v23 }
 0x380   : > { %v2352_v36 = vpop.eup %2351  ;;  %v1146_v49 = vsel %vm898_vm3, %v1145_v35, %v1121_v45 }
 0x381   : > { %v1018_v46 = vadd.f32 1.0, %v2352_v36  ;;  %v1144_v42 = vadd.f32 %v1143_v30, %v1142_v59 }
 0x383   : > { %2353 = vrcp.f32 %v1018_v46  ;;  %v1148_v17 = vsel %vm1147_vm6, %v1146_v49, %v1144_v42  ;;  %v3588_v49 = vld [vmem:[#allocation16_spill] sm:$0xff] }
 0x384   : > { %2160 = vmatprep.subr.msk.mxu1 %vm1054_vm1, %v1148_v17  ;;  %2355 = vpow2.f32 %v1687_v47 }
 0x385   : > { %2161 = vmatpush3.xpose.msk.msra.mxu1 %vm1054_vm1, %v1148_v17  ;;  %2357 = vpow2.f32 %v1689_v56  ;;  %v1677_v17 = vsub.f32 0.0, %v3588_v49 }
 0x386   : > { %2188 = vmatprep.subr.msk.mxu1 %vm1429_vm7, %v1398_v60 }
 0x388   : > { %2163 = vmatmul.mubr.msk.f32.vlgmr.msra.gmra.mrb[4].mxu1 %vm1054_vm1, %v3255_v41 }
 0x389   : > { %2165 = vmatprep.mubr.msk.f32.mxu1 %vm1054_vm1, %v3260_v29  ;;  %2189 = vmatpush3.msk.msra.mxu1 %vm1429_vm7, %v1398_v60 }
 0x38c   : > { %2166 = vmatmul.mubr.msk.f32.gmra.mrb[6].mxu1 %vm1054_vm1, %v3274_v6 }
 0x38d   : > { %v2354_v25 = vpop.eup %2353  ;;  %2168 = vmatprep.mubr.msk.f32.mxu1 %vm1054_vm1, %v3279_v13 }
 0x38e   : > { %v3322_v19 = vmul.f32 %v2354_v25, %v986_v22  ;;  %v2356_v14 = vpop.eup %2355 }
 0x38f   : > { %v1702_v0 = vadd.f32 1.0, %v2356_v14  ;;  %v2358_v32 = vpop.eup %2357 }
 0x390   : > { %2185 = vmatprep.mubr.msk.f32.mxu0 %vm1054_vm1, %v3322_v19  ;;  %2169 = vmatmul.mubr.msk.f32.gmra.mrb[8].mxu1 %vm1054_vm1, %v3286_v54  ;;  %v1703_v35 = vadd.f32 1.0, %v2358_v32 }
 0x391   : > { %2186 = vmatmul.mubr.msk.f32.gmra.mrb[10].mxu0 %vm1054_vm1, %v3269_v20  ;;  %2171 = vmatprep.mubr.msk.f32.mxu1 %vm1054_vm1, %v3322_v19  ;;  %2359 = vrcp.f32 %v1702_v0 }
 0x392   : > { %2361 = vrcp.f32 %v1703_v35 }
 0x394   : > { %2172 = vmatmul.mubr.msk.f32.gmra.mrb[10].mxu1 %vm1054_vm1, %v3269_v20 }
 0x39f   : > { %v2178_v55 = vpop.f32.mrb[4].mxu0 }
 0x3a0   : > { %v1351_v62 = vpop.f32.mrb[5].mxu0 }
 0x3a3   : > { %v2181_v12 = vpop.f32.mrb[6].mxu0 }
 0x3a4   : > { %v1361_v3 = vpop.f32.mrb[7].mxu0 }
 0x3a8   : > { %v2184_v28 = vpop.f32.mrb[8].mxu0 }
 0x3a9   : > { %v1371_v8 = vpop.f32.mrb[9].mxu0 }
 0x45b   : > { %v2164_v51 = vpop.f32.mrb[4].mxu1 }
 0x45c   : > { %v1391_v10 = vmul.f32 %v2178_v55, %v2164_v51  ;;  %v1242_v16 = vpop.f32.mrb[5].mxu1 }
 0x45d   : > { %v1390_v44 = vmul.f32 %v1351_v62, %v1242_v16  ;;  %v1685_v62 = vmul.f32 1.442695, %v1677_v17 }
 0x45f   : > { %v2167_v34 = vpop.f32.mrb[6].mxu1  ;;  %2190 = vmatprep.mubr.msk.f32.mxu1 %vm1404_vm8, %v1390_v44  ;;  %2363 = vpow2.f32 %v1685_v62 }
 0x460   : > { %v1393_v31 = vmul.f32 %v2181_v12, %v2167_v34  ;;  %v1252_v33 = vpop.f32.mrb[7].mxu1  ;;  %2191 = vmatmul.mubr.msk.f32.vlgmr.msra.gmra.mrb[12].mxu1 %vm1404_vm8, %v1391_v10  ;;  %v2360_v12 = vpop.eup %2359 }
 0x461   : > { %v1392_v7 = vmul.f32 %v1361_v3, %v1252_v33  ;;  %v2362_v51 = vpop.eup %2361 }
 0x462   : > { %v1727_v44 = vmul.f32 %v2362_v51, %v3587_v1  ;;  %v3589_v1 = vld [vmem:[#allocation14_spill] sm:$0xff] }
 0x463   : > { %v2170_v61 = vpop.f32.mrb[8].mxu1  ;;  %2193 = vmatprep.mubr.msk.f32.mxu1 %vm1404_vm8, %v1392_v7  ;;  %v1681_v9 = vsub.f32 0.0, %v3589_v1 }
 0x464   : > { %v2187_v27 = vpop.f32.mrb[10].mxu0  ;;  %v1395_v24 = vmul.f32 %v2184_v28, %v2170_v61  ;;  %v1262_v39 = vpop.f32.mrb[9].mxu1  ;;  %2194 = vmatmul.mubr.msk.f32.gmra.mrb[14].mxu1 %vm1404_vm8, %v1393_v31 }
 0x465   : > { %v1381_v22 = vpop.f32.mrb[11].mxu0  ;;  %v1394_v26 = vmul.f32 %v1371_v8, %v1262_v39  ;;  %v1693_v0 = vmul.f32 1.442695, %v1681_v9 }
 0x467   : > { %v2173_v2 = vpop.f32.mrb[10].mxu1  ;;  %2196 = vmatprep.mubr.msk.f32.mxu1 %vm1404_vm8, %v1394_v26 }
 0x468   : > { %v1397_v11 = vmul.f32 %v2187_v27, %v2173_v2  ;;  %v1272_v18 = vpop.f32.mrb[11].mxu1  ;;  %2197 = vmatmul.mubr.msk.f32.gmra.mrb[16].mxu1 %vm1404_vm8, %v1395_v24 }
 0x469   : > { %v1396_v58 = vmul.f32 %v1381_v22, %v1272_v18 }
 0x46b   : > { %2199 = vmatprep.mubr.msk.f32.mxu1 %vm1404_vm8, %v1396_v58 }
 0x46c   : > { %2200 = vmatmul.mubr.msk.f32.gmra.mrb[18].mxu1 %vm1404_vm8, %v1397_v11 }
 0x533   : > { %v2192_v38 = vpop.f32.mrb[12].mxu1 }
 0x534   : > { %v1505_v15 = vadd.f32 %v2192_v38, %v2068_v57  ;;  %v1499_v48 = vpop.f32.mrb[13].mxu1  ;;  %v3590_v38 = vld [vmem:[#allocation19_spill] sm:$0xff] }
 0x535   : > { %v1500_v63 = vadd.f32 %v2068_v57, %v1499_v48  ;;  %v1680_v14 = vsub.f32 0.0, %v3590_v38 }
 0x536   : > { %v1539_v37 = vmul.f32 %v1505_v15, %v3255_v41 }
 0x537   : > { %v2195_v5 = vpop.f32.mrb[14].mxu1  ;;  %v1538_v40 = vmul.f32 %v1500_v63, %v3257_v21 }
 0x538   : > { %v1515_v4 = vadd.f32 %v2195_v5, %v2068_v57  ;;  %v1509_v53 = vpop.f32.mrb[15].mxu1  ;;  %v1549_v50 = vsel %vm1054_vm1, %v1539_v37, 0.0  ;;  %v3591_v5 = vld [vmem:[#allocation18_spill] sm:$0xff] }
 0x539   : > { %v1510_v23 = vadd.f32 %v2068_v57, %v1509_v53  ;;  %1550 = vadd.xlane.f32.xlu1 %v1549_v50  ;;  %v1546_v59 = vsel %vm1054_vm1, %v1538_v40, 0.0  ;;  %v3592_v53 = vld [vmem:[#allocation13_spill] sm:$0xff] }
 0x53a   : > { %1547 = vadd.xlane.f32.xlu0 %v1546_v59  ;;  %v1541_v30 = vmul.f32 %v1515_v4, %v3274_v6  ;;  %v1682_v50 = vsub.f32 0.0, %v3592_v53 }
 0x53b   : > { %v2198_v36 = vpop.f32.mrb[16].mxu1  ;;  %v1540_v21 = vmul.f32 %v1510_v23, %v3260_v29  ;;  %v1726_v29 = vmul.f32 %v2360_v12, %v3586_v52  ;;  %v1691_v23 = vmul.f32 1.442695, %v1680_v14 }
 0x53c   : > { %v1519_v41 = vpop.f32.mrb[17].mxu1  ;;  %v1555_v45 = vsel %vm1054_vm1, %v1541_v30, 0.0  ;;  %v1525_v46 = vadd.f32 %v2198_v36, %v2068_v57 }
 0x53d   : > { %v1520_v25 = vadd.f32 %v2068_v57, %v1519_v41  ;;  %v1552_v55 = vsel %vm1054_vm1, %v1540_v21, 0.0 }
 0x53e   : > { %1556 = vadd.xlane.f32.xlu0 %v1555_v45  ;;  %v1543_v6 = vmul.f32 %v1525_v46, %v3286_v54  ;;  %v1695_v46 = vmul.f32 1.442695, %v1682_v50 }
 0x53f   : > { %v2201_v42 = vpop.f32.mrb[18].mxu1  ;;  %v3356_v8 = vmul.f32 %v1520_v25, %v3279_v13 }
 0x540   : > { %v1529_v60 = vpop.f32.mrb[19].mxu1  ;;  %v1561_v28 = vsel %vm1054_vm1, %v1543_v6, 0.0  ;;  %v1535_v10 = vadd.f32 %v2201_v42, %v2068_v57 }
 0x541   : > { %v1530_v3 = vadd.f32 %v2068_v57, %v1529_v60  ;;  %v1558_v16 = vsel %vm1054_vm1, %v3356_v8, 0.0 }
 0x542   : > { %1553 = vadd.xlane.f32.xlu0 %v1552_v55  ;;  %v3369_v34 = vmul.f32 %v1535_v10, %v3269_v20 }
 0x543   : > { %v3362_v54 = vmul.f32 %v1530_v3, %v3322_v19  ;;  %v2364_v19 = vpop.eup %2363 }
 0x544   : > { %v1567_v31 = vsel %vm1054_vm1, %v3369_v34, 0.0  ;;  %v1701_v33 = vadd.f32 1.0, %v2364_v19 }
 0x545   : > { %v1564_v13 = vsel %vm1054_vm1, %v3362_v54, 0.0 }
 0x546   : > { %1562 = vadd.xlane.f32.xlu0 %v1561_v28  ;;  %2365 = vrcp.f32 %v1701_v33 }
 0x547   : > { %2367 = vpow2.f32 %v1693_v0 }
 0x548   : > { %2369 = vpow2.f32 %v1691_v23 }
 0x54a   : > { %1743 = vrot.lane.b32.xlu1 %v1726_v29, %s2547_s10  ;;  %1559 = vadd.xlane.f32.xlu0 %v1558_v16 }
 0x54e   : > { %1745 = vrot.lane.b32.xlu1 %v1727_v44, %s2547_s10  ;;  %1565 = vadd.xlane.f32.xlu0 %v1564_v13 }
 0x550   : > { %v2366_v7 = vpop.eup %2365 }
 0x551   : > { %v1725_v61 = vmul.f32 %v2366_v7, %v3588_v49  ;;  %v2368_v29 = vpop.eup %2367 }
 0x552   : > { %1568 = vadd.xlane.f32.xlu0 %v1567_v31  ;;  %v2370_v16 = vpop.eup %2369  ;;  %v1705_v44 = vadd.f32 1.0, %v2368_v29 }
 0x553   : > { %v1704_v31 = vadd.f32 1.0, %v2370_v16 }
 0x568   : > { %1741 = vrot.lane.b32.xlu0 %v1725_v61, %s2547_s10 }
 0x5c6   : > { %v1551_v27 = vpop.xlane.xlu1 %1550 }
 0x5c7   : > { %v1572_v24 = vmul.f32 0.03125, %v1551_v27  ;;  %v1548_v39 = vpop.xlane.xlu0 %1547 }
 0x5c8   : > { %v1571_v20 = vmul.f32 0.03125, %v1548_v39 }
 0x5c9   : > { %v3376_v22 = vsub.f32 %v1539_v37, %v1572_v24 }
 0x5ca   : > { %v3378_v26 = vsub.f32 %v1538_v40, %v1571_v20  ;;  %v1683_v40 = vsub.f32 0.0, %v3591_v5  ;;  %v1773_v20 = vld [vmem:[%s3533_s3] sm:$0xff] }
 0x5cb   : > { %v1557_v2 = vpop.xlane.xlu0 %1556  ;;  %v1588_v11 = vmul.f32 %v3376_v22, %v3376_v22 }
 0x5cc   : > { %v1574_v18 = vmul.f32 0.03125, %v1557_v2  ;;  %v1587_v52 = vmul.f32 %v3378_v26, %v3378_v26  ;;  %v1697_v36 = vmul.f32 1.442695, %v1683_v40  ;;  %v1774_v2 = vld [vmem:[%s3533_s3 + $0x8] sm:$0xff] }
 0x5cd   : > { %v1598_v58 = vsel %vm1054_vm1, %v1588_v11, 0.0  ;;  %v2226_v11 = vpack.c.bf16 %v1774_v2, %v1773_v20 }
 0x5ce   : > { %v3385_v43 = vsub.f32 %v1541_v30, %v1574_v18  ;;  %1599 = vadd.xlane.f32.xlu0 %v1598_v58  ;;  %v1595_v15 = vsel %vm1054_vm1, %v1587_v52, 0.0  ;;  %2371 = vpow2.f32 %v1697_v36  ;;  %v1775_v18 = vld [vmem:[%s3533_s3 + $0x10] sm:$0xff]  ;;  %v1776_v58 = vld [vmem:[%s3533_s3 + $0x18] sm:$0xff] }
 0x5cf   : > { %v1554_v47 = vpop.xlane.xlu0 %1553  ;;  %2373 = vpow2.f32 %v1695_v46  ;;  %2227 = vmatprep.subr.bf16.mxu0 %v2226_v11 }
 0x5d0   : > { %v1573_v56 = vmul.f32 0.03125, %v1554_v47  ;;  %v1590_v57 = vmul.f32 %v3385_v43, %v3385_v43  ;;  %v2230_v47 = vpack.c.bf16 %v1776_v58, %v1775_v18  ;;  %2229 = vmatpush3.bf16.msra.mxu0 %v2226_v11 }
 0x5d2   : > { %v3392_v48 = vsub.f32 %v1540_v21, %v1573_v56  ;;  %1596 = vadd.xlane.f32.xlu0 %v1595_v15  ;;  %v1604_v63 = vsel %vm1054_vm1, %v1590_v57, 0.0  ;;  %v3593_v21 = vld [vmem:[#allocation17_spill] sm:$0xff]  ;;  %2231 = vmatprep.subr.bf16.mxu0 %v2230_v47 }
 0x5d3   : > { %1605 = vadd.xlane.f32.xlu1 %v1604_v63  ;;  %v1563_v37 = vpop.xlane.xlu0 %1562  ;;  %v1684_v42 = vsub.f32 0.0, %v3593_v21 }
 0x5d4   : > { %v1576_v32 = vmul.f32 0.03125, %v1563_v37  ;;  %v1589_v4 = vmul.f32 %v3392_v48, %v3392_v48  ;;  %2233 = vmatpush3.bf16.msra.mxu0 %v2230_v47 }
 0x5d6   : > { %v3399_v59 = vsub.f32 %v1543_v6, %v1576_v32  ;;  %v1601_v30 = vsel %vm1054_vm1, %v1589_v4, 0.0  ;;  %v1699_v6 = vmul.f32 1.442695, %v1684_v42 }
 0x5d7   : > { %v1560_v35 = vpop.xlane.xlu0 %1559  ;;  %1602 = vadd.xlane.f32.xlu0 %v1601_v30 }
 0x5d8   : > { %v1575_v41 = vmul.f32 0.03125, %v1560_v35  ;;  %v1592_v45 = vmul.f32 %v3399_v59, %v3399_v59  ;;  %2375 = vpow2.f32 %v1699_v6  ;;  %v2372_v13 = vpop.eup %2371 }
 0x5d9   : > { %v2374_v33 = vpop.eup %2373  ;;  %2377 = vrcp.f32 %v1705_v44  ;;  %v1707_v7 = vadd.f32 1.0, %v2372_v13 }
 0x5da   : > { %v3406_v49 = vsub.f32 %v3356_v8, %v1575_v41  ;;  %v1610_v17 = vsel %vm1054_vm1, %v1592_v45, 0.0  ;;  %v1706_v61 = vadd.f32 1.0, %v2374_v33  ;;  %2379 = vrcp.f32 %v1704_v31 }
 0x5db   : > { %1611 = vadd.xlane.f32.xlu1 %v1610_v17  ;;  %v1566_v60 = vpop.xlane.xlu0 %1565  ;;  %2381 = vrcp.f32 %v1707_v7  ;;  %v2078_v17 = vld [vmem:[#allocation5 + $0x8f] ss:$0 sm:$0xff] }
 0x5dc   : > { %v1577_v25 = vmul.f32 0.03125, %v1566_v60  ;;  %v1591_v55 = vmul.f32 %v3406_v49, %v3406_v49  ;;  %2383 = vrcp.f32 %v1706_v61 }
 0x5de   : > { %v3412_v62 = vsub.f32 %v3362_v54, %v1577_v25  ;;  %v1607_v12 = vsel %vm1054_vm1, %v1591_v55, 0.0 }
 0x5df   : > { %1608 = vadd.xlane.f32.xlu0 %v1607_v12  ;;  %v1569_v3 = vpop.xlane.xlu0 %1568 }
 0x5e0   : > { %v1578_v28 = vmul.f32 0.03125, %v1569_v3  ;;  %v1593_v8 = vmul.f32 %v3412_v62, %v3412_v62 }
 0x5e2   : > { %v3418_v51 = vsub.f32 %v3369_v34, %v1578_v28  ;;  %v1613_v10 = vsel %vm1054_vm1, %v1593_v8, 0.0  ;;  %v2376_v34 = vpop.eup %2375  ;;  %v2079_v8 = vld [vmem:[#allocation5 + $0x90] ss:$0 sm:$0xff] }
 0x5e3   : > { %1614 = vadd.xlane.f32.xlu0 %v1613_v10  ;;  %v1708_v27 = vadd.f32 1.0, %v2376_v34  ;;  %v2378_v24 = vpop.eup %2377  ;;  %v1742_v37 = vpop.permute.xlu0 %1741 }
 0x5e4   : > { %v1594_v54 = vmul.f32 %v3418_v51, %v3418_v51  ;;  %v2380_v39 = vpop.eup %2379  ;;  %v1729_v52 = vmul.f32 %v2378_v24, %v3589_v1 }
 0x5e5   : > { %2385 = vrcp.f32 %v1708_v27  ;;  %v2382_v9 = vpop.eup %2381  ;;  %v1728_v56 = vmul.f32 %v2380_v39, %v3590_v38  ;;  %v1744_v38 = vpop.permute.xlu1 %1743 }
 0x5e6   : > { %v1616_v19 = vsel %vm1054_vm1, %v1594_v54, 0.0  ;;  %v2384_v57 = vpop.eup %2383  ;;  %v1731_v14 = vmul.f32 %v2382_v9, %v3591_v5 }
 0x5e7   : > { %1617 = vadd.xlane.f32.xlu1 %v1616_v19  ;;  %v1730_v15 = vmul.f32 %v2384_v57, %v3592_v53 }
 0x5e9   : > { %v1746_v40 = vpop.permute.xlu1 %1745 }
 0x5ef   : > { %v2386_v63 = vpop.eup %2385 }
 0x5f0   : > { %v1732_v1 = vmul.f32 %v2386_v63, %v3593_v21 }
 0x5f8   : > { %1749 = vrot.lane.b32.xlu1 %v1729_v52, %s2547_s10 }
 0x5f9   : > { %1747 = vrot.lane.b32.xlu0 %v1728_v56, %s2547_s10 }
 0x5fc   : > { %1753 = vrot.lane.b32.xlu1 %v1731_v14, %s2547_s10 }
 0x5fd   : > { %1751 = vrot.lane.b32.xlu0 %v1730_v15, %s2547_s10 }
 0x601   : > { %1755 = vrot.lane.b32.xlu0 %v1732_v1, %s2547_s10  ;;  %s3481_s10 = scalar_lea.hbm %s3535_s5, %s2094_s11 }
 0x65b   : > { %v1600_v0 = vpop.xlane.xlu0 %1599 }
 0x65c   : > { %v1620_v32 = vmul.f32 0.03125, %v1600_v0 }
 0x65e   : > { %v1628_v4 = vadd.f32 1e-05, %v1620_v32 }
 0x65f   : > { %v1597_v50 = vpop.xlane.xlu0 %1596 }
 0x660   : > { %2387 = vrsqrt.f32 %v1628_v4  ;;  %v1619_v5 = vmul.f32 0.03125, %v1597_v50  ;;  %v1606_v53 = vpop.xlane.xlu1 %1605 }
 0x661   : > { %v1622_v23 = vmul.f32 0.03125, %v1606_v53 }
 0x662   : > { %v1627_v30 = vadd.f32 1e-05, %v1619_v5 }
 0x663   : > { %v1630_v35 = vadd.f32 1e-05, %v1622_v23 }
 0x664   : > { %2389 = vrsqrt.f32 %v1627_v30  ;;  %v1603_v36 = vpop.xlane.xlu0 %1602 }
 0x665   : > { %2391 = vrsqrt.f32 %v1630_v35  ;;  %v1621_v41 = vmul.f32 0.03125, %v1603_v36  ;;  %v2403_v36 = vld [vmem:[%s2732_s7 + $0x8] sm:$0xff] }
 0x667   : > { %v1629_v45 = vadd.f32 1e-05, %v1621_v41 }
 0x668   : > { %v1612_v46 = vpop.xlane.xlu1 %1611 }
 0x669   : > { %2393 = vrsqrt.f32 %v1629_v45  ;;  %v1624_v21 = vmul.f32 0.03125, %v1612_v46  ;;  %v2404_v45 = vld [vmem:[%s2732_s7] sm:$0xff] }
 0x66a   : > { %v2388_v42 = vpop.eup %2387 }
 0x66b   : > { %v1644_v60 = vmul.f32 %v2388_v42, %v3376_v22  ;;  %v1632_v25 = vadd.f32 1e-05, %v1624_v21  ;;  %v2405_v42 = vld [vmem:[%s2732_s7 + $0x18] sm:$0xff] }
 0x66c   : > { %v1609_v55 = vpop.xlane.xlu0 %1608 }
 0x66d   : > { %2395 = vrsqrt.f32 %v1632_v25  ;;  %v1623_v6 = vmul.f32 0.03125, %v1609_v55  ;;  %v1657_v3 = vmul.f32 %v2078_v17, %v1644_v60  ;;  %v2406_v25 = vld [vmem:[%s2732_s7 + $0x10] sm:$0xff] }
 0x66e   : > { %v2390_v12 = vpop.eup %2389 }
 0x66f   : > { %v2392_v28 = vpop.eup %2391  ;;  %v1643_v29 = vmul.f32 %v2390_v12, %v3378_v26  ;;  %v1631_v10 = vadd.f32 1e-05, %v1623_v6  ;;  %v1670_v31 = vadd.f32 %v2079_v8, %v1657_v3  ;;  %v2407_v12 = vld [vmem:[%s2732_s7 + $0x28] sm:$0xff] }
 0x670   : > { %v1615_v16 = vpop.xlane.xlu0 %1614  ;;  %v1646_v54 = vmul.f32 %v2392_v28, %v3385_v43 }
 0x671   : > { %2397 = vrsqrt.f32 %v1631_v10  ;;  %v1625_v44 = vmul.f32 0.03125, %v1615_v16  ;;  %v1656_v13 = vmul.f32 %v2078_v17, %v1643_v29  ;;  %v1766_v39 = vmul.f32 %v1744_v38, %v1670_v31  ;;  %v2409_v16 = vld [vmem:[%s2732_s7 + $0x38] sm:$0xff] }
 0x672   : > { %v1659_v33 = vmul.f32 %v2078_v17, %v1646_v54 }
 0x673   : > { %v2394_v19 = vpop.eup %2393  ;;  %v1633_v22 = vadd.f32 1e-05, %v1625_v44  ;;  %v1669_v7 = vadd.f32 %v2079_v8, %v1656_v13  ;;  %v2410_v13 = vld [vmem:[%s2732_s7 + $0x30] sm:$0xff] }
 0x674   : > { %v1645_v61 = vmul.f32 %v2394_v19, %v3392_v48  ;;  %v1618_v34 = vpop.xlane.xlu1 %1617  ;;  %v1672_v11 = vadd.f32 %v2079_v8, %v1659_v33  ;;  %v1748_v43 = vpop.permute.xlu0 %1747 }
 0x675   : > { %2399 = vrsqrt.f32 %v1633_v22  ;;  %v1626_v27 = vmul.f32 0.03125, %v1618_v34  ;;  %v1765_v24 = vmul.f32 %v1742_v37, %v1669_v7 }
 0x676   : > { %v1658_v26 = vmul.f32 %v2078_v17, %v1645_v61  ;;  %v1768_v47 = vmul.f32 %v1748_v43, %v1672_v11 }
 0x677   : > { %v2396_v20 = vpop.eup %2395  ;;  %v1634_v2 = vadd.f32 1e-05, %v1626_v27  ;;  %2210 = vmatprep.mubr.msk.f32.mxu0 %vm1054_vm1, %v1765_v24 }
 0x678   : > { %2211 = vmatmul.mubr.msk.f32.vlgmr.msra.gmra.mrb[12].mxu0 %vm1054_vm1, %v1766_v39  ;;  %v1648_v18 = vmul.f32 %v2396_v20, %v3399_v59  ;;  %v1671_v58 = vadd.f32 %v2079_v8, %v1658_v26  ;;  %v1750_v15 = vpop.permute.xlu1 %1749  ;;  %v1752_v37 = vpop.permute.xlu0 %1751 }
 0x679   : > { %2401 = vrsqrt.f32 %v1634_v2 }
 0x67a   : > { %v1767_v52 = vmul.f32 %v1746_v40, %v1671_v58  ;;  %v1661_v9 = vmul.f32 %v2078_v17, %v1648_v18 }
 0x67b   : > { %v2398_v48 = vpop.eup %2397 }
 0x67c   : > { %v1647_v56 = vmul.f32 %v2398_v48, %v3406_v49  ;;  %2213 = vmatprep.mubr.msk.f32.mxu0 %vm1054_vm1, %v1767_v52  ;;  %v1674_v63 = vadd.f32 %v2079_v8, %v1661_v9  ;;  %v1754_v50 = vpop.permute.xlu1 %1753  ;;  %v1756_v23 = vpop.permute.xlu0 %1755 }
 0x67d   : > { %2214 = vmatmul.mubr.msk.f32.gmra.mrb[14].mxu0 %vm1054_vm1, %v1768_v47 }
 0x67e   : > { %v1660_v57 = vmul.f32 %v2078_v17, %v1647_v56  ;;  %v1770_v32 = vmul.f32 %v1752_v37, %v1674_v63 }
 0x67f   : > { %v2400_v14 = vpop.eup %2399 }
 0x680   : > { %v1673_v1 = vadd.f32 %v2079_v8, %v1660_v57  ;;  %v1649_v38 = vmul.f32 %v2400_v14, %v3412_v62 }
 0x682   : > { %v1769_v59 = vmul.f32 %v1750_v15, %v1673_v1  ;;  %v1662_v0 = vmul.f32 %v2078_v17, %v1649_v38 }
 0x683   : > { %v2402_v40 = vpop.eup %2401 }
 0x684   : > { %v1675_v4 = vadd.f32 %v2079_v8, %v1662_v0  ;;  %v1650_v49 = vmul.f32 %v2402_v40, %v3418_v51  ;;  %2216 = vmatprep.mubr.msk.f32.mxu0 %vm1054_vm1, %v1769_v59 }
 0x685   : > { %2217 = vmatmul.mubr.msk.f32.gmra.mrb[16].mxu0 %vm1054_vm1, %v1770_v32 }
 0x686   : > { %v1771_v5 = vmul.f32 %v1754_v50, %v1675_v4  ;;  %v1663_v53 = vmul.f32 %v2078_v17, %v1650_v49 }
 0x688   : > { %v1676_v62 = vadd.f32 %v2079_v8, %v1663_v53  ;;  %2219 = vmatprep.mubr.msk.f32.mxu0 %vm1054_vm1, %v1771_v5  ;;  %v2408_v8 = vld [vmem:[%s2732_s7 + $0x20] sm:$0xff] }
 0x68a   : > { %v1772_v30 = vmul.f32 %v1756_v23, %v1676_v62 }
 0x68c   : > { %2220 = vmatmul.mubr.msk.f32.gmra.mrb[18].mxu0 %vm1054_vm1, %v1772_v30 }
 0x74b   : > { %v2212_v35 = vpop.f32.mrb[12].mxu0 }
 0x74c   : > { %v1907_v51 = vadd.f32 %v2403_v36, %v2212_v35  ;;  %v1867_v41 = vpop.f32.mrb[13].mxu0 }
 0x74d   : > { %v1906_v46 = vadd.f32 %v2404_v45, %v1867_v41 }
 0x74e   : > { %1915 = vst.msk [vmem:[%s257_s13 + $0x8] sm:$0xff] %vm268_vm0, %v1907_v51 }
 0x74f   : > { %1914 = vst.msk [vmem:[%s257_s13] sm:$0xff] %vm268_vm0, %v1906_v46 }
 0x750   : > { %v2215_v21 = vpop.f32.mrb[14].mxu0 }
 0x751   : > { %v1909_v17 = vadd.f32 %v2405_v42, %v2215_v21  ;;  %v1877_v60 = vpop.f32.mrb[15].mxu0 }
 0x752   : > { %v1908_v55 = vadd.f32 %v2406_v25, %v1877_v60 }
 0x753   : > { %1917 = vst.msk [vmem:[%s257_s13 + $0x18] sm:$0xff] %vm268_vm0, %v1909_v17 }
 0x754   : > { %1916 = vst.msk [vmem:[%s257_s13 + $0x10] sm:$0xff] %vm268_vm0, %v1908_v55 }
 0x758   : > { %v2218_v6 = vpop.f32.mrb[16].mxu0 }
 0x759   : > { %v1911_v3 = vadd.f32 %v2407_v12, %v2218_v6  ;;  %v1887_v28 = vpop.f32.mrb[17].mxu0 }
 0x75a   : > { %v1910_v29 = vadd.f32 %v2408_v8, %v1887_v28 }
 0x75b   : > { %1919 = vst.msk [vmem:[%s257_s13 + $0x28] sm:$0xff] %vm268_vm0, %v1911_v3 }
 0x75c   : > { %1918 = vst.msk [vmem:[%s257_s13 + $0x20] sm:$0xff] %vm268_vm0, %v1910_v29 }
 0x75f   : > { %v2221_v10 = vpop.f32.mrb[18].mxu0 }
 0x760   : > { %v1913_v54 = vadd.f32 %v2409_v16, %v2221_v10  ;;  %v1897_v44 = vpop.f32.mrb[19].mxu0 }
 0x761   : > { %v1912_v31 = vadd.f32 %v2410_v13, %v1897_v44 }
 0x762   : > { %1921 = vst.msk [vmem:[%s257_s13 + $0x38] sm:$0xff] %vm268_vm0, %v1913_v54 }
 0x763   : > { %1920 = vst.msk [vmem:[%s257_s13 + $0x30] sm:$0xff] %vm268_vm0, %v1912_v31 }
 0x764   : > { %2482 = shalt.err (!%p2479_p7)
}
 0x765   : > { %s2483_s7 = scalar_lea.hbm %s3481_s10, 1024  ;;  %s2487_s6 = scalar_lea.hbm %s3535_s5, 2048 }
 0x766   : > { %p2484_p9 = scmp.ne.s32.totalorder %s3481_s10, %s2483_s7  ;;  %p2488_p5 = scmp.lt.u32.totalorder %s3481_s10, %s3535_s5 }
 0x767   : > { %p2489_p11 = scmp.lt.u32.totalorder %s2487_s6, %s2483_s7  ;;  %p2491_p4 = scmp.lt.u32.totalorder %s2483_s7, %s3481_s10 }
 0x768   : > { %p2485_p1 = pnand %p2484_p9, %p2675_p12 }
 0x769   : > { %p2490_p2 = por %p2489_p11, %p2488_p5 }
 0x76a   : > { %p2486_p0 = pneg %p2485_p1 }
 0x76b   : > { %p2492_p6 = por %p2491_p4, %p2490_p2 }
 0x76d   : > { %p2493_p8 = pnand %p2492_p6, %p2486_p0 }
 0x76f   : > { %2496 = shalt.err (!%p2493_p8)
}
 0x770   : > { %s2549_s11 = smov 128   ;;  %s2550_s28 = smov 8  }
 0x771   : > { %2242 = dma.vmem_to_hbm [thread:$0]  (%p2675_p12), %s3483_s29, 1024, %s3481_s10, %s1923_s22, %s2549_s11, %s2549_s11, %s2550_s28  }
 0x772 PF: > { %s1951_s27 = sand.u32 1, %s2527_s18   ;;  %p3594_p10 = scmp.ne.s32.totalorder %s3560_s25, 0 }
 0x773   : > { %p3595_p13 = scmp.ge.s32.totalorder %s2539_s21, 2  ;;  %s1952_s12 = scalar_lea.sflag [#allocation4], %s1951_s27 }
 0x775   : > { %p2253_p3 = pnand %p3595_p13, %p3594_p10 }
 0x777   : > { %2522 = dma.done.wait (!%p2253_p3), %s1952_s12, 1024  }
 0x778   : > { %2524 = vsyncadd (!%p2253_p3), %s1952_s12, 4294966272  ;;  %p19_p7 = scmp.ge.s32.totalorder %s2637_s30, 4   ;;  %s3596_s18 = smov %s2531_s19 }
 0x779   : > { %s3597_s19 = smov %s2535_s20  ;;  %s3598_s20 = smov %s2671_s8 }
 0x77a   : > { %s3599_s21 = smov %s2637_s30  ;;  %21 = sbr.rel (!%p19_p7) target bundleno = 6 (0x6), region = 89 }
 0x781   :  { %1957 = vsyncpa [#allocation3], 1 }
 0x782   :  { %1959 = vsyncpa [#allocation3 + $0x1], 1 }
 0x783   :  { %1960 = vsyncpa [#allocation6], 1 }
 0x784   :  { %1961 = vsyncpa [#allocation4], 1 }
 0x785   :  { %1963 = vsyncpa [#allocation4 + $0x1], 1 }

</bundles_post_ra>
